<compile_context>
chip_gen: v7x
topology: tpu7x:2x2x1
jax: 0.10.0
libtpu: 0.0.40
codegen_flags: <defaults>
</compile_context>

<pallas_src>
import functools

import jax
import jax.numpy as jnp
import numpy as np
from jax.experimental import pallas as pl
from jax.experimental.pallas import tpu as pltpu


# ----------------------------- Pallas kernel -----------------------------

def _facconv_kernel_factory(*, n, c_in, c_out, kk, pad, wp2, l1, l_out, h2,
                            w_out, eps):
    """Builds the fused ReLU -> conv(Kx1) -> conv(1xK) -> BatchNorm kernel."""
    inv_count = 1.0 / float(n * h2 * w_out)
    pw = pad * wp2                       # flattened size of one conv2 H-pad row

    def kernel(x_ref, w1_ref, w2_ref, g_ref, b_ref, o_ref, stk1_ref, stk2_ref):
        w1v = w1_ref[...]                # (C_in,  K*C_in)
        w2v = w2_ref[...]                # (C_out, K*C_in)

        # Conv2's H zero-padding / tap-overrun columns of the stacked operand are
        # static: zero them ONCE; the interior is overwritten every image.
        for j in range(kk):
            r0, r1 = j * c_in, (j + 1) * c_in
            q0 = max(0, pw - j)
            q1 = min(l_out, pw - j + l1)
            if q0 > 0:
                stk2_ref[r0:r1, 0:q0] = jnp.zeros((c_in, q0), jnp.float32)
            if q1 < l_out:
                stk2_ref[r0:r1, q1:l_out] = jnp.zeros((c_in, l_out - q1),
                                                      jnp.float32)

        # ---- per image: ReLU -> conv(Kx1) -> conv(1xK) -> compact rows ----
        for img in range(n):
            xr = jnp.maximum(x_ref[img], 0.0)            # fused ReLU, (C_in, L_in)

            # conv (K,1): the K H-shifted full-width windows are contiguous runs of
            # the flattened spatial axis; stack them along sublanes -> ONE MXU dot.
            for j in range(kk):
                stk1_ref[j * c_in:(j + 1) * c_in, :] = xr[:, j * wp2:j * wp2 + l1]
            y1 = jnp.dot(w1v, stk1_ref[...],
                         preferred_element_type=jnp.float32)       # (C_in, l1)

            # conv (1,K): fold each tap's W-shift into where y1 lands in the stacked
            # operand (borders stay zero from the one-time fill) -> ONE MXU dot.
            for j in range(kk):
                q0 = max(0, pw - j)
                q1 = min(l_out, pw - j + l1)
                stk2_ref[j * c_in:(j + 1) * c_in, q0:q1] = \
                    y1[:, q0 + j - pw:q1 + j - pw]
            y2 = jnp.dot(w2v, stk2_ref[...],
                         preferred_element_type=jnp.float32)       # (C_out, l_out)

            # Drop the (wp2 - w_out) wrapped columns of each row while the data is
            # still in registers: the output slab becomes lane-dense (one wide store
            # per image) and the BN stats below need no validity mask.
            for r in range(h2):
                o_ref[img, :, r * w_out:(r + 1) * w_out] = \
                    y2[:, r * wp2:r * wp2 + w_out]

        # ---- BatchNorm2d (training-mode batch stats), fully in-kernel ----
        # Two-pass mean / centered variance on the VMEM-resident compact slabs.
        acc = o_ref[0]
        for img in range(1, n):
            acc = acc + o_ref[img]
        mean = jnp.sum(acc, axis=1, keepdims=True) * inv_count     # (C_out, 1)
        vsum = jnp.zeros((c_out, 1), jnp.float32)
        for img in range(n):
            d = o_ref[img] - mean
            vsum = vsum + jnp.sum(d * d, axis=1, keepdims=True)
        scale = g_ref[...] * jax.lax.rsqrt(vsum * inv_count + eps) # (C_out, 1)
        shift = b_ref[...] - mean * scale
        for img in range(n):
            o_ref[img] = o_ref[img] * scale + shift

    return kernel


def _facconv_fused(xflat, w1s, w2s, gamma, beta, *, kk, pad, wp2, l1, h2,
                   w_out, eps):
    """xflat: (N, C_in, Hp*Wp2) padded+flattened input.  Returns (N, C_out, H2*W_out)."""
    n, c_in, l_in = xflat.shape
    c_out = w2s.shape[0]
    l_out = h2 * wp2
    l_c = h2 * w_out

    kernel = _facconv_kernel_factory(
        n=n, c_in=c_in, c_out=c_out, kk=kk, pad=pad, wp2=wp2, l1=l1,
        l_out=l_out, h2=h2, w_out=w_out, eps=eps)

    return pl.pallas_call(
        kernel,
        out_shape=jax.ShapeDtypeStruct((n, c_out, l_c), jnp.float32),
        grid=(1,),
        in_specs=[pl.BlockSpec((n, c_in, l_in), lambda i: (0, 0, 0)),
                  pl.BlockSpec((c_in, kk * c_in), lambda i: (0, 0)),
                  pl.BlockSpec((c_out, kk * c_in), lambda i: (0, 0)),
                  pl.BlockSpec((c_out, 1), lambda i: (0, 0)),
                  pl.BlockSpec((c_out, 1), lambda i: (0, 0))],
        out_specs=pl.BlockSpec((n, c_out, l_c), lambda i: (0, 0, 0)),
        scratch_shapes=[pltpu.VMEM((kk * c_in, l1), jnp.float32),
                        pltpu.VMEM((kk * c_in, l_out), jnp.float32)],
        compiler_params=pltpu.CompilerParams(
            dimension_semantics=("arbitrary",)),
    )(xflat, w1s, w2s, gamma, beta)


# ----------------------------- forward pass -----------------------------

@functools.partial(jax.jit, static_argnames=("stride", "padding", "eps"))
def fac_conv_forward(x, w1, w2, gamma, beta, *, stride, padding, eps=1e-5):
    """x: (N, C_in, H, W) NCHW.  w1: (C_in, C_in, K, 1).  w2: (C_out, C_in, 1, K)."""
    if stride != 1:
        # TODO(synk): general stride needs strided (non-contiguous) windows; only the
        # stride=1 configuration used by this module instance is implemented.
        raise NotImplementedError("Pallas FacConv path supports stride=1 only")
    n, c_in, h, w = x.shape
    kk = w1.shape[2]
    c_out = w2.shape[0]
    p = padding

    hp = h + 2 * p                 # conv1 padded input height
    wp2 = w + 4 * p                # width with conv1 + conv2 W-padding folded in
    h1 = hp - kk + 1               # conv1 output height
    h2 = h1 + 2 * p                # conv2 output height
    w_out = wp2 - kk + 1           # conv2 output width
    l1 = h1 * wp2

    # Cheap layout prep in XLA: one small input pad + tiny weight re-pack
    # (no im2col, no intermediate pads/transposes, no output transpose).
    xflat = jnp.pad(x, ((0, 0), (0, 0), (p, p), (2 * p, 2 * p))) \
               .reshape(n, c_in, hp * wp2).astype(jnp.float32)
    # w1s[m, j*C_in + c] = w1[m, c, j, 0];  w2s[o, j*C_in + c] = w2[o, c, 0, j]
    w1s = jnp.transpose(w1[:, :, :, 0], (0, 2, 1)).reshape(c_in, kk * c_in)
    w2s = jnp.transpose(w2[:, :, 0, :], (0, 2, 1)).reshape(c_out, kk * c_in)
    g2 = gamma.reshape(c_out, 1).astype(jnp.float32)
    b2 = beta.reshape(c_out, 1).astype(jnp.float32)

    out_flat = _facconv_fused(xflat, w1s.astype(jnp.float32),
                              w2s.astype(jnp.float32), g2, b2,
                              kk=kk, pad=p, wp2=wp2, l1=l1, h2=h2,
                              w_out=w_out, eps=eps)
    # free reshape: (N, C_out, H2*W_out) is bit-identical to NCHW (N, C_out, H2, W_out)
    return out_flat.reshape(n, c_out, h2, w_out)


# ----------------------------- reference (pure JAX) -----------------------------

def fac_conv_reference(x, w1, w2, gamma, beta, stride, padding, eps=1e-5):
    y = jnp.maximum(x, 0.0)
    dn = ("NCHW", "OIHW", "NCHW")
    pads = [(padding, padding), (padding, padding)]
    y = jax.lax.conv_general_dilated(y, w1, (stride, stride), pads, dimension_numbers=dn)
    y = jax.lax.conv_general_dilated(y, w2, (stride, stride), pads, dimension_numbers=dn)
    mean = y.mean(axis=(0, 2, 3), keepdims=True)
    var = y.var(axis=(0, 2, 3), keepdims=True)
    return ((y - mean) / jnp.sqrt(var + eps)) * gamma.reshape(1, -1, 1, 1) + beta.reshape(1, -1, 1, 1)


# ----------------------------- main -----------------------------

if __name__ == "__main__":
    # FacConv(C_in=4, C_out=8, kernel_length=3, stride=1, padding=1, affine=True)
    N, C_IN, C_OUT, H, W = 2, 4, 8, 16, 16
    K, STRIDE, PADDING = 3, 1, 1

    key = jax.random.PRNGKey(0)
    kx, kw1, kw2 = jax.random.split(key, 3)
    x = jax.random.normal(kx, (N, C_IN, H, W), jnp.float32)
    w1 = jax.random.normal(kw1, (C_IN, C_IN, K, 1), jnp.float32) * 0.1
    w2 = jax.random.normal(kw2, (C_OUT, C_IN, 1, K), jnp.float32) * 0.1
    gamma = jnp.ones((C_OUT,), jnp.float32)   # affine=True default init
    beta = jnp.zeros((C_OUT,), jnp.float32)

    out = fac_conv_forward(x, w1, w2, gamma, beta, stride=STRIDE, padding=PADDING)
    out = jax.block_until_ready(out)

    ref = fac_conv_reference(x, w1, w2, gamma, beta, STRIDE, PADDING)
    np.testing.assert_allclose(np.asarray(out), np.asarray(ref), atol=1e-4, rtol=1e-4)

    print("KERNEL_OK")
</pallas_src>

<mosaic_0001>
module attributes {stable_mosaic.version = 11 : i64} {
  func.func @kernel(%arg0: i32, %arg1: memref<2x4x360xf32, #tpu.memory_space<vmem>>, %arg2: memref<4x12xf32, #tpu.memory_space<vmem>>, %arg3: memref<8x12xf32, #tpu.memory_space<vmem>>, %arg4: memref<8x1xf32, #tpu.memory_space<vmem>>, %arg5: memref<8x1xf32, #tpu.memory_space<vmem>>, %arg6: memref<2x8x324xf32, #tpu.memory_space<vmem>>, %arg7: memref<12x320xf32, #tpu.memory_space<vmem>>, %arg8: memref<12x360xf32, #tpu.memory_space<vmem>>) attributes {dimension_semantics = [#tpu.dimension_semantics<arbitrary>], iteration_bounds = array<i64: 1>, scalar_prefetch = 0 : i64, scratch_operands = 2 : i64, tpu.core_type = #tpu.core_type<tc>, window_params = [{pipeline_mode = #tpu.pipeline_mode<synchronous>, transform_indices = @transform_0, window_bounds = array<i64: 2, 4, 360>}, {pipeline_mode = #tpu.pipeline_mode<synchronous>, transform_indices = @transform_1, window_bounds = array<i64: 4, 12>}, {pipeline_mode = #tpu.pipeline_mode<synchronous>, transform_indices = @transform_2, window_bounds = array<i64: 8, 12>}, {pipeline_mode = #tpu.pipeline_mode<synchronous>, transform_indices = @transform_3, window_bounds = array<i64: 8, 1>}, {pipeline_mode = #tpu.pipeline_mode<synchronous>, transform_indices = @transform_4, window_bounds = array<i64: 8, 1>}, {pipeline_mode = #tpu.pipeline_mode<synchronous>, transform_indices = @transform_5, window_bounds = array<i64: 2, 8, 324>}]} {
    %c0 = arith.constant 0 : index
    %c0_0 = arith.constant 0 : index
    %0 = vector.load %arg2[%c0, %c0_0] : memref<4x12xf32, #tpu.memory_space<vmem>>, vector<4x12xf32>
    %c0_1 = arith.constant 0 : index
    %c0_2 = arith.constant 0 : index
    %1 = vector.load %arg3[%c0_1, %c0_2] : memref<8x12xf32, #tpu.memory_space<vmem>>, vector<8x12xf32>
    %cst = arith.constant 0.000000e+00 : f32
    %2 = vector.broadcast %cst : f32 to vector<4x20xf32>
    %c0_3 = arith.constant 0 : index
    %c0_4 = arith.constant 0 : index
    %3 = vector.load %arg8[%c0_3, %c0_4] : memref<12x360xf32, #tpu.memory_space<vmem>>, vector<4x20xf32>
    tpu.vector_store %arg8[%c0_3, %c0_4], %2 {strides = array<i32>} : memref<12x360xf32, #tpu.memory_space<vmem>>, vector<4x20xf32>,
    %cst_5 = arith.constant 0.000000e+00 : f32
    %4 = vector.broadcast %cst_5 : f32 to vector<4x20xf32>
    %c0_6 = arith.constant 0 : index
    %c340 = arith.constant 340 : index
    %5 = vector.load %arg8[%c0_6, %c340] : memref<12x360xf32, #tpu.memory_space<vmem>>, vector<4x20xf32>
    tpu.vector_store %arg8[%c0_6, %c340], %4 {strides = array<i32>} : memref<12x360xf32, #tpu.memory_space<vmem>>, vector<4x20xf32>,
    %cst_7 = arith.constant 0.000000e+00 : f32
    %6 = vector.broadcast %cst_7 : f32 to vector<4x19xf32>
    %c4 = arith.constant 4 : index
    %c0_8 = arith.constant 0 : index
    %7 = vector.load %arg8[%c4, %c0_8] : memref<12x360xf32, #tpu.memory_space<vmem>>, vector<4x19xf32>
    tpu.vector_store %arg8[%c4, %c0_8], %6 {strides = array<i32>} : memref<12x360xf32, #tpu.memory_space<vmem>>, vector<4x19xf32>,
    %cst_9 = arith.constant 0.000000e+00 : f32
    %8 = vector.broadcast %cst_9 : f32 to vector<4x21xf32>
    %c4_10 = arith.constant 4 : index
    %c339 = arith.constant 339 : index
    %9 = vector.load %arg8[%c4_10, %c339] : memref<12x360xf32, #tpu.memory_space<vmem>>, vector<4x21xf32>
    tpu.vector_store %arg8[%c4_10, %c339], %8 {strides = array<i32>} : memref<12x360xf32, #tpu.memory_space<vmem>>, vector<4x21xf32>,
    %cst_11 = arith.constant 0.000000e+00 : f32
    %10 = vector.broadcast %cst_11 : f32 to vector<4x18xf32>
    %c8 = arith.constant 8 : index
    %c0_12 = arith.constant 0 : index
    %11 = vector.load %arg8[%c8, %c0_12] : memref<12x360xf32, #tpu.memory_space<vmem>>, vector<4x18xf32>
    tpu.vector_store %arg8[%c8, %c0_12], %10 {strides = array<i32>} : memref<12x360xf32, #tpu.memory_space<vmem>>, vector<4x18xf32>,
    %cst_13 = arith.constant 0.000000e+00 : f32
    %12 = vector.broadcast %cst_13 : f32 to vector<4x22xf32>
    %c8_14 = arith.constant 8 : index
    %c338 = arith.constant 338 : index
    %13 = vector.load %arg8[%c8_14, %c338] : memref<12x360xf32, #tpu.memory_space<vmem>>, vector<4x22xf32>
    tpu.vector_store %arg8[%c8_14, %c338], %12 {strides = array<i32>} : memref<12x360xf32, #tpu.memory_space<vmem>>, vector<4x22xf32>,
    %c0_15 = arith.constant 0 : index
    %c0_16 = arith.constant 0 : index
    %c0_17 = arith.constant 0 : index
    %14 = vector.load %arg1[%c0_15, %c0_16, %c0_17] : memref<2x4x360xf32, #tpu.memory_space<vmem>>, vector<1x4x360xf32>
    %15 = vector.shape_cast %14 : vector<1x4x360xf32> to vector<4x360xf32>
    %cst_18 = arith.constant 0.000000e+00 : f32
    %16 = vector.broadcast %cst_18 : f32 to vector<4x360xf32>
    %17 = arith.maximumf %15, %16 : vector<4x360xf32>
    %18 = vector.extract_strided_slice %17 {offsets = [0, 0], sizes = [4, 320], strides = [1, 1]} : vector<4x360xf32> to vector<4x320xf32>
    %c0_19 = arith.constant 0 : index
    %c0_20 = arith.constant 0 : index
    %19 = vector.load %arg7[%c0_19, %c0_20] : memref<12x320xf32, #tpu.memory_space<vmem>>, vector<4x320xf32>
    tpu.vector_store %arg7[%c0_19, %c0_20], %18 {strides = array<i32>} : memref<12x320xf32, #tpu.memory_space<vmem>>, vector<4x320xf32>,
    %20 = vector.extract_strided_slice %17 {offsets = [0, 20], sizes = [4, 320], strides = [1, 1]} : vector<4x360xf32> to vector<4x320xf32>
    %c4_21 = arith.constant 4 : index
    %c0_22 = arith.constant 0 : index
    %21 = vector.load %arg7[%c4_21, %c0_22] : memref<12x320xf32, #tpu.memory_space<vmem>>, vector<4x320xf32>
    tpu.vector_store %arg7[%c4_21, %c0_22], %20 {strides = array<i32>} : memref<12x320xf32, #tpu.memory_space<vmem>>, vector<4x320xf32>,
    %22 = vector.extract_strided_slice %17 {offsets = [0, 40], sizes = [4, 320], strides = [1, 1]} : vector<4x360xf32> to vector<4x320xf32>
    %c8_23 = arith.constant 8 : index
    %c0_24 = arith.constant 0 : index
    %23 = vector.load %arg7[%c8_23, %c0_24] : memref<12x320xf32, #tpu.memory_space<vmem>>, vector<4x320xf32>
    tpu.vector_store %arg7[%c8_23, %c0_24], %22 {strides = array<i32>} : memref<12x320xf32, #tpu.memory_space<vmem>>, vector<4x320xf32>,
    %c0_25 = arith.constant 0 : index
    %c0_26 = arith.constant 0 : index
    %24 = vector.load %arg7[%c0_25, %c0_26] : memref<12x320xf32, #tpu.memory_space<vmem>>, vector<12x320xf32>
    %cst_27 = arith.constant dense<0.000000e+00> : vector<4x320xf32>
    %25 = tpu.matmul %0, %24, %cst_27 {dimension_numbers = #tpu.dot_dimension_numbers<[1], [0], [0], [1], [0, 0, 1, 1], [], []>} : vector<4x12xf32>, vector<12x320xf32>, vector<4x320xf32> -> vector<4x320xf32>
    %c0_28 = arith.constant 0 : index
    %c20 = arith.constant 20 : index
    %26 = vector.load %arg8[%c0_28, %c20] : memref<12x360xf32, #tpu.memory_space<vmem>>, vector<4x320xf32>
    tpu.vector_store %arg8[%c0_28, %c20], %25 {strides = array<i32>} : memref<12x360xf32, #tpu.memory_space<vmem>>, vector<4x320xf32>,
    %c4_29 = arith.constant 4 : index
    %c19 = arith.constant 19 : index
    %27 = vector.load %arg8[%c4_29, %c19] : memref<12x360xf32, #tpu.memory_space<vmem>>, vector<4x320xf32>
    tpu.vector_store %arg8[%c4_29, %c19], %25 {strides = array<i32>} : memref<12x360xf32, #tpu.memory_space<vmem>>, vector<4x320xf32>,
    %c8_30 = arith.constant 8 : index
    %c18 = arith.constant 18 : index
    %28 = vector.load %arg8[%c8_30, %c18] : memref<12x360xf32, #tpu.memory_space<vmem>>, vector<4x320xf32>
    tpu.vector_store %arg8[%c8_30, %c18], %25 {strides = array<i32>} : memref<12x360xf32, #tpu.memory_space<vmem>>, vector<4x320xf32>,
    %c0_31 = arith.constant 0 : index
    %c0_32 = arith.constant 0 : index
    %29 = vector.load %arg8[%c0_31, %c0_32] : memref<12x360xf32, #tpu.memory_space<vmem>>, vector<12x360xf32>
    %cst_33 = arith.constant dense<0.000000e+00> : vector<8x360xf32>
    %30 = tpu.matmul %1, %29, %cst_33 {dimension_numbers = #tpu.dot_dimension_numbers<[1], [0], [0], [1], [0, 0, 1, 1], [], []>} : vector<8x12xf32>, vector<12x360xf32>, vector<8x360xf32> -> vector<8x360xf32>
    %31 = vector.extract_strided_slice %30 {offsets = [0, 0], sizes = [8, 18], strides = [1, 1]} : vector<8x360xf32> to vector<8x18xf32>
    %c0_34 = arith.constant 0 : index
    %c0_35 = arith.constant 0 : index
    %c0_36 = arith.constant 0 : index
    %32 = vector.load %arg6[%c0_34, %c0_35, %c0_36] : memref<2x8x324xf32, #tpu.memory_space<vmem>>, vector<1x8x18xf32>
    %33 = vector.shape_cast %32 : vector<1x8x18xf32> to vector<8x18xf32>
    %34 = vector.shape_cast %31 : vector<8x18xf32> to vector<1x8x18xf32>
    tpu.vector_store %arg6[%c0_34, %c0_35, %c0_36], %34 {strides = array<i32>} : memref<2x8x324xf32, #tpu.memory_space<vmem>>, vector<1x8x18xf32>,
    %35 = vector.extract_strided_slice %30 {offsets = [0, 20], sizes = [8, 18], strides = [1, 1]} : vector<8x360xf32> to vector<8x18xf32>
    %c0_37 = arith.constant 0 : index
    %c0_38 = arith.constant 0 : index
    %c18_39 = arith.constant 18 : index
    %36 = vector.load %arg6[%c0_37, %c0_38, %c18_39] : memref<2x8x324xf32, #tpu.memory_space<vmem>>, vector<1x8x18xf32>
    %37 = vector.shape_cast %36 : vector<1x8x18xf32> to vector<8x18xf32>
    %38 = vector.shape_cast %35 : vector<8x18xf32> to vector<1x8x18xf32>
    tpu.vector_store %arg6[%c0_37, %c0_38, %c18_39], %38 {strides = array<i32>} : memref<2x8x324xf32, #tpu.memory_space<vmem>>, vector<1x8x18xf32>,
    %39 = vector.extract_strided_slice %30 {offsets = [0, 40], sizes = [8, 18], strides = [1, 1]} : vector<8x360xf32> to vector<8x18xf32>
    %c0_40 = arith.constant 0 : index
    %c0_41 = arith.constant 0 : index
    %c36 = arith.constant 36 : index
    %40 = vector.load %arg6[%c0_40, %c0_41, %c36] : memref<2x8x324xf32, #tpu.memory_space<vmem>>, vector<1x8x18xf32>
    %41 = vector.shape_cast %40 : vector<1x8x18xf32> to vector<8x18xf32>
    %42 = vector.shape_cast %39 : vector<8x18xf32> to vector<1x8x18xf32>
    tpu.vector_store %arg6[%c0_40, %c0_41, %c36], %42 {strides = array<i32>} : memref<2x8x324xf32, #tpu.memory_space<vmem>>, vector<1x8x18xf32>,
    %43 = vector.extract_strided_slice %30 {offsets = [0, 60], sizes = [8, 18], strides = [1, 1]} : vector<8x360xf32> to vector<8x18xf32>
    %c0_42 = arith.constant 0 : index
    %c0_43 = arith.constant 0 : index
    %c54 = arith.constant 54 : index
    %44 = vector.load %arg6[%c0_42, %c0_43, %c54] : memref<2x8x324xf32, #tpu.memory_space<vmem>>, vector<1x8x18xf32>
    %45 = vector.shape_cast %44 : vector<1x8x18xf32> to vector<8x18xf32>
    %46 = vector.shape_cast %43 : vector<8x18xf32> to vector<1x8x18xf32>
    tpu.vector_store %arg6[%c0_42, %c0_43, %c54], %46 {strides = array<i32>} : memref<2x8x324xf32, #tpu.memory_space<vmem>>, vector<1x8x18xf32>,
    %47 = vector.extract_strided_slice %30 {offsets = [0, 80], sizes = [8, 18], strides = [1, 1]} : vector<8x360xf32> to vector<8x18xf32>
    %c0_44 = arith.constant 0 : index
    %c0_45 = arith.constant 0 : index
    %c72 = arith.constant 72 : index
    %48 = vector.load %arg6[%c0_44, %c0_45, %c72] : memref<2x8x324xf32, #tpu.memory_space<vmem>>, vector<1x8x18xf32>
    %49 = vector.shape_cast %48 : vector<1x8x18xf32> to vector<8x18xf32>
    %50 = vector.shape_cast %47 : vector<8x18xf32> to vector<1x8x18xf32>
    tpu.vector_store %arg6[%c0_44, %c0_45, %c72], %50 {strides = array<i32>} : memref<2x8x324xf32, #tpu.memory_space<vmem>>, vector<1x8x18xf32>,
    %51 = vector.extract_strided_slice %30 {offsets = [0, 100], sizes = [8, 18], strides = [1, 1]} : vector<8x360xf32> to vector<8x18xf32>
    %c0_46 = arith.constant 0 : index
    %c0_47 = arith.constant 0 : index
    %c90 = arith.constant 90 : index
    %52 = vector.load %arg6[%c0_46, %c0_47, %c90] : memref<2x8x324xf32, #tpu.memory_space<vmem>>, vector<1x8x18xf32>
    %53 = vector.shape_cast %52 : vector<1x8x18xf32> to vector<8x18xf32>
    %54 = vector.shape_cast %51 : vector<8x18xf32> to vector<1x8x18xf32>
    tpu.vector_store %arg6[%c0_46, %c0_47, %c90], %54 {strides = array<i32>} : memref<2x8x324xf32, #tpu.memory_space<vmem>>, vector<1x8x18xf32>,
    %55 = vector.extract_strided_slice %30 {offsets = [0, 120], sizes = [8, 18], strides = [1, 1]} : vector<8x360xf32> to vector<8x18xf32>
    %c0_48 = arith.constant 0 : index
    %c0_49 = arith.constant 0 : index
    %c108 = arith.constant 108 : index
    %56 = vector.load %arg6[%c0_48, %c0_49, %c108] : memref<2x8x324xf32, #tpu.memory_space<vmem>>, vector<1x8x18xf32>
    %57 = vector.shape_cast %56 : vector<1x8x18xf32> to vector<8x18xf32>
    %58 = vector.shape_cast %55 : vector<8x18xf32> to vector<1x8x18xf32>
    tpu.vector_store %arg6[%c0_48, %c0_49, %c108], %58 {strides = array<i32>} : memref<2x8x324xf32, #tpu.memory_space<vmem>>, vector<1x8x18xf32>,
    %59 = vector.extract_strided_slice %30 {offsets = [0, 140], sizes = [8, 18], strides = [1, 1]} : vector<8x360xf32> to vector<8x18xf32>
    %c0_50 = arith.constant 0 : index
    %c0_51 = arith.constant 0 : index
    %c126 = arith.constant 126 : index
    %60 = vector.load %arg6[%c0_50, %c0_51, %c126] : memref<2x8x324xf32, #tpu.memory_space<vmem>>, vector<1x8x18xf32>
    %61 = vector.shape_cast %60 : vector<1x8x18xf32> to vector<8x18xf32>
    %62 = vector.shape_cast %59 : vector<8x18xf32> to vector<1x8x18xf32>
    tpu.vector_store %arg6[%c0_50, %c0_51, %c126], %62 {strides = array<i32>} : memref<2x8x324xf32, #tpu.memory_space<vmem>>, vector<1x8x18xf32>,
    %63 = vector.extract_strided_slice %30 {offsets = [0, 160], sizes = [8, 18], strides = [1, 1]} : vector<8x360xf32> to vector<8x18xf32>
    %c0_52 = arith.constant 0 : index
    %c0_53 = arith.constant 0 : index
    %c144 = arith.constant 144 : index
    %64 = vector.load %arg6[%c0_52, %c0_53, %c144] : memref<2x8x324xf32, #tpu.memory_space<vmem>>, vector<1x8x18xf32>
    %65 = vector.shape_cast %64 : vector<1x8x18xf32> to vector<8x18xf32>
    %66 = vector.shape_cast %63 : vector<8x18xf32> to vector<1x8x18xf32>
    tpu.vector_store %arg6[%c0_52, %c0_53, %c144], %66 {strides = array<i32>} : memref<2x8x324xf32, #tpu.memory_space<vmem>>, vector<1x8x18xf32>,
    %67 = vector.extract_strided_slice %30 {offsets = [0, 180], sizes = [8, 18], strides = [1, 1]} : vector<8x360xf32> to vector<8x18xf32>
    %c0_54 = arith.constant 0 : index
    %c0_55 = arith.constant 0 : index
    %c162 = arith.constant 162 : index
    %68 = vector.load %arg6[%c0_54, %c0_55, %c162] : memref<2x8x324xf32, #tpu.memory_space<vmem>>, vector<1x8x18xf32>
    %69 = vector.shape_cast %68 : vector<1x8x18xf32> to vector<8x18xf32>
    %70 = vector.shape_cast %67 : vector<8x18xf32> to vector<1x8x18xf32>
    tpu.vector_store %arg6[%c0_54, %c0_55, %c162], %70 {strides = array<i32>} : memref<2x8x324xf32, #tpu.memory_space<vmem>>, vector<1x8x18xf32>,
    %71 = vector.extract_strided_slice %30 {offsets = [0, 200], sizes = [8, 18], strides = [1, 1]} : vector<8x360xf32> to vector<8x18xf32>
    %c0_56 = arith.constant 0 : index
    %c0_57 = arith.constant 0 : index
    %c180 = arith.constant 180 : index
    %72 = vector.load %arg6[%c0_56, %c0_57, %c180] : memref<2x8x324xf32, #tpu.memory_space<vmem>>, vector<1x8x18xf32>
    %73 = vector.shape_cast %72 : vector<1x8x18xf32> to vector<8x18xf32>
    %74 = vector.shape_cast %71 : vector<8x18xf32> to vector<1x8x18xf32>
    tpu.vector_store %arg6[%c0_56, %c0_57, %c180], %74 {strides = array<i32>} : memref<2x8x324xf32, #tpu.memory_space<vmem>>, vector<1x8x18xf32>,
    %75 = vector.extract_strided_slice %30 {offsets = [0, 220], sizes = [8, 18], strides = [1, 1]} : vector<8x360xf32> to vector<8x18xf32>
    %c0_58 = arith.constant 0 : index
    %c0_59 = arith.constant 0 : index
    %c198 = arith.constant 198 : index
    %76 = vector.load %arg6[%c0_58, %c0_59, %c198] : memref<2x8x324xf32, #tpu.memory_space<vmem>>, vector<1x8x18xf32>
    %77 = vector.shape_cast %76 : vector<1x8x18xf32> to vector<8x18xf32>
    %78 = vector.shape_cast %75 : vector<8x18xf32> to vector<1x8x18xf32>
    tpu.vector_store %arg6[%c0_58, %c0_59, %c198], %78 {strides = array<i32>} : memref<2x8x324xf32, #tpu.memory_space<vmem>>, vector<1x8x18xf32>,
    %79 = vector.extract_strided_slice %30 {offsets = [0, 240], sizes = [8, 18], strides = [1, 1]} : vector<8x360xf32> to vector<8x18xf32>
    %c0_60 = arith.constant 0 : index
    %c0_61 = arith.constant 0 : index
    %c216 = arith.constant 216 : index
    %80 = vector.load %arg6[%c0_60, %c0_61, %c216] : memref<2x8x324xf32, #tpu.memory_space<vmem>>, vector<1x8x18xf32>
    %81 = vector.shape_cast %80 : vector<1x8x18xf32> to vector<8x18xf32>
    %82 = vector.shape_cast %79 : vector<8x18xf32> to vector<1x8x18xf32>
    tpu.vector_store %arg6[%c0_60, %c0_61, %c216], %82 {strides = array<i32>} : memref<2x8x324xf32, #tpu.memory_space<vmem>>, vector<1x8x18xf32>,
    %83 = vector.extract_strided_slice %30 {offsets = [0, 260], sizes = [8, 18], strides = [1, 1]} : vector<8x360xf32> to vector<8x18xf32>
    %c0_62 = arith.constant 0 : index
    %c0_63 = arith.constant 0 : index
    %c234 = arith.constant 234 : index
    %84 = vector.load %arg6[%c0_62, %c0_63, %c234] : memref<2x8x324xf32, #tpu.memory_space<vmem>>, vector<1x8x18xf32>
    %85 = vector.shape_cast %84 : vector<1x8x18xf32> to vector<8x18xf32>
    %86 = vector.shape_cast %83 : vector<8x18xf32> to vector<1x8x18xf32>
    tpu.vector_store %arg6[%c0_62, %c0_63, %c234], %86 {strides = array<i32>} : memref<2x8x324xf32, #tpu.memory_space<vmem>>, vector<1x8x18xf32>,
    %87 = vector.extract_strided_slice %30 {offsets = [0, 280], sizes = [8, 18], strides = [1, 1]} : vector<8x360xf32> to vector<8x18xf32>
    %c0_64 = arith.constant 0 : index
    %c0_65 = arith.constant 0 : index
    %c252 = arith.constant 252 : index
    %88 = vector.load %arg6[%c0_64, %c0_65, %c252] : memref<2x8x324xf32, #tpu.memory_space<vmem>>, vector<1x8x18xf32>
    %89 = vector.shape_cast %88 : vector<1x8x18xf32> to vector<8x18xf32>
    %90 = vector.shape_cast %87 : vector<8x18xf32> to vector<1x8x18xf32>
    tpu.vector_store %arg6[%c0_64, %c0_65, %c252], %90 {strides = array<i32>} : memref<2x8x324xf32, #tpu.memory_space<vmem>>, vector<1x8x18xf32>,
    %91 = vector.extract_strided_slice %30 {offsets = [0, 300], sizes = [8, 18], strides = [1, 1]} : vector<8x360xf32> to vector<8x18xf32>
    %c0_66 = arith.constant 0 : index
    %c0_67 = arith.constant 0 : index
    %c270 = arith.constant 270 : index
    %92 = vector.load %arg6[%c0_66, %c0_67, %c270] : memref<2x8x324xf32, #tpu.memory_space<vmem>>, vector<1x8x18xf32>
    %93 = vector.shape_cast %92 : vector<1x8x18xf32> to vector<8x18xf32>
    %94 = vector.shape_cast %91 : vector<8x18xf32> to vector<1x8x18xf32>
    tpu.vector_store %arg6[%c0_66, %c0_67, %c270], %94 {strides = array<i32>} : memref<2x8x324xf32, #tpu.memory_space<vmem>>, vector<1x8x18xf32>,
    %95 = vector.extract_strided_slice %30 {offsets = [0, 320], sizes = [8, 18], strides = [1, 1]} : vector<8x360xf32> to vector<8x18xf32>
    %c0_68 = arith.constant 0 : index
    %c0_69 = arith.constant 0 : index
    %c288 = arith.constant 288 : index
    %96 = vector.load %arg6[%c0_68, %c0_69, %c288] : memref<2x8x324xf32, #tpu.memory_space<vmem>>, vector<1x8x18xf32>
    %97 = vector.shape_cast %96 : vector<1x8x18xf32> to vector<8x18xf32>
    %98 = vector.shape_cast %95 : vector<8x18xf32> to vector<1x8x18xf32>
    tpu.vector_store %arg6[%c0_68, %c0_69, %c288], %98 {strides = array<i32>} : memref<2x8x324xf32, #tpu.memory_space<vmem>>, vector<1x8x18xf32>,
    %99 = vector.extract_strided_slice %30 {offsets = [0, 340], sizes = [8, 18], strides = [1, 1]} : vector<8x360xf32> to vector<8x18xf32>
    %c0_70 = arith.constant 0 : index
    %c0_71 = arith.constant 0 : index
    %c306 = arith.constant 306 : index
    %100 = vector.load %arg6[%c0_70, %c0_71, %c306] : memref<2x8x324xf32, #tpu.memory_space<vmem>>, vector<1x8x18xf32>
    %101 = vector.shape_cast %100 : vector<1x8x18xf32> to vector<8x18xf32>
    %102 = vector.shape_cast %99 : vector<8x18xf32> to vector<1x8x18xf32>
    tpu.vector_store %arg6[%c0_70, %c0_71, %c306], %102 {strides = array<i32>} : memref<2x8x324xf32, #tpu.memory_space<vmem>>, vector<1x8x18xf32>,
    %c1 = arith.constant 1 : index
    %c0_72 = arith.constant 0 : index
    %c0_73 = arith.constant 0 : index
    %103 = vector.load %arg1[%c1, %c0_72, %c0_73] : memref<2x4x360xf32, #tpu.memory_space<vmem>>, vector<1x4x360xf32>
    %104 = vector.shape_cast %103 : vector<1x4x360xf32> to vector<4x360xf32>
    %cst_74 = arith.constant 0.000000e+00 : f32
    %105 = vector.broadcast %cst_74 : f32 to vector<4x360xf32>
    %106 = arith.maximumf %104, %105 : vector<4x360xf32>
    %107 = vector.extract_strided_slice %106 {offsets = [0, 0], sizes = [4, 320], strides = [1, 1]} : vector<4x360xf32> to vector<4x320xf32>
    %c0_75 = arith.constant 0 : index
    %c0_76 = arith.constant 0 : index
    %108 = vector.load %arg7[%c0_75, %c0_76] : memref<12x320xf32, #tpu.memory_space<vmem>>, vector<4x320xf32>
    tpu.vector_store %arg7[%c0_75, %c0_76], %107 {strides = array<i32>} : memref<12x320xf32, #tpu.memory_space<vmem>>, vector<4x320xf32>,
    %109 = vector.extract_strided_slice %106 {offsets = [0, 20], sizes = [4, 320], strides = [1, 1]} : vector<4x360xf32> to vector<4x320xf32>
    %c4_77 = arith.constant 4 : index
    %c0_78 = arith.constant 0 : index
    %110 = vector.load %arg7[%c4_77, %c0_78] : memref<12x320xf32, #tpu.memory_space<vmem>>, vector<4x320xf32>
    tpu.vector_store %arg7[%c4_77, %c0_78], %109 {strides = array<i32>} : memref<12x320xf32, #tpu.memory_space<vmem>>, vector<4x320xf32>,
    %111 = vector.extract_strided_slice %106 {offsets = [0, 40], sizes = [4, 320], strides = [1, 1]} : vector<4x360xf32> to vector<4x320xf32>
    %c8_79 = arith.constant 8 : index
    %c0_80 = arith.constant 0 : index
    %112 = vector.load %arg7[%c8_79, %c0_80] : memref<12x320xf32, #tpu.memory_space<vmem>>, vector<4x320xf32>
    tpu.vector_store %arg7[%c8_79, %c0_80], %111 {strides = array<i32>} : memref<12x320xf32, #tpu.memory_space<vmem>>, vector<4x320xf32>,
    %c0_81 = arith.constant 0 : index
    %c0_82 = arith.constant 0 : index
    %113 = vector.load %arg7[%c0_81, %c0_82] : memref<12x320xf32, #tpu.memory_space<vmem>>, vector<12x320xf32>
    %cst_83 = arith.constant dense<0.000000e+00> : vector<4x320xf32>
    %114 = tpu.matmul %0, %113, %cst_83 {dimension_numbers = #tpu.dot_dimension_numbers<[1], [0], [0], [1], [0, 0, 1, 1], [], []>} : vector<4x12xf32>, vector<12x320xf32>, vector<4x320xf32> -> vector<4x320xf32>
    %c0_84 = arith.constant 0 : index
    %c20_85 = arith.constant 20 : index
    %115 = vector.load %arg8[%c0_84, %c20_85] : memref<12x360xf32, #tpu.memory_space<vmem>>, vector<4x320xf32>
    tpu.vector_store %arg8[%c0_84, %c20_85], %114 {strides = array<i32>} : memref<12x360xf32, #tpu.memory_space<vmem>>, vector<4x320xf32>,
    %c4_86 = arith.constant 4 : index
    %c19_87 = arith.constant 19 : index
    %116 = vector.load %arg8[%c4_86, %c19_87] : memref<12x360xf32, #tpu.memory_space<vmem>>, vector<4x320xf32>
    tpu.vector_store %arg8[%c4_86, %c19_87], %114 {strides = array<i32>} : memref<12x360xf32, #tpu.memory_space<vmem>>, vector<4x320xf32>,
    %c8_88 = arith.constant 8 : index
    %c18_89 = arith.constant 18 : index
    %117 = vector.load %arg8[%c8_88, %c18_89] : memref<12x360xf32, #tpu.memory_space<vmem>>, vector<4x320xf32>
    tpu.vector_store %arg8[%c8_88, %c18_89], %114 {strides = array<i32>} : memref<12x360xf32, #tpu.memory_space<vmem>>, vector<4x320xf32>,
    %c0_90 = arith.constant 0 : index
    %c0_91 = arith.constant 0 : index
    %118 = vector.load %arg8[%c0_90, %c0_91] : memref<12x360xf32, #tpu.memory_space<vmem>>, vector<12x360xf32>
    %cst_92 = arith.constant dense<0.000000e+00> : vector<8x360xf32>
    %119 = tpu.matmul %1, %118, %cst_92 {dimension_numbers = #tpu.dot_dimension_numbers<[1], [0], [0], [1], [0, 0, 1, 1], [], []>} : vector<8x12xf32>, vector<12x360xf32>, vector<8x360xf32> -> vector<8x360xf32>
    %120 = vector.extract_strided_slice %119 {offsets = [0, 0], sizes = [8, 18], strides = [1, 1]} : vector<8x360xf32> to vector<8x18xf32>
    %c1_93 = arith.constant 1 : index
    %c0_94 = arith.constant 0 : index
    %c0_95 = arith.constant 0 : index
    %121 = vector.load %arg6[%c1_93, %c0_94, %c0_95] : memref<2x8x324xf32, #tpu.memory_space<vmem>>, vector<1x8x18xf32>
    %122 = vector.shape_cast %121 : vector<1x8x18xf32> to vector<8x18xf32>
    %123 = vector.shape_cast %120 : vector<8x18xf32> to vector<1x8x18xf32>
    tpu.vector_store %arg6[%c1_93, %c0_94, %c0_95], %123 {strides = array<i32>} : memref<2x8x324xf32, #tpu.memory_space<vmem>>, vector<1x8x18xf32>,
    %124 = vector.extract_strided_slice %119 {offsets = [0, 20], sizes = [8, 18], strides = [1, 1]} : vector<8x360xf32> to vector<8x18xf32>
    %c1_96 = arith.constant 1 : index
    %c0_97 = arith.constant 0 : index
    %c18_98 = arith.constant 18 : index
    %125 = vector.load %arg6[%c1_96, %c0_97, %c18_98] : memref<2x8x324xf32, #tpu.memory_space<vmem>>, vector<1x8x18xf32>
    %126 = vector.shape_cast %125 : vector<1x8x18xf32> to vector<8x18xf32>
    %127 = vector.shape_cast %124 : vector<8x18xf32> to vector<1x8x18xf32>
    tpu.vector_store %arg6[%c1_96, %c0_97, %c18_98], %127 {strides = array<i32>} : memref<2x8x324xf32, #tpu.memory_space<vmem>>, vector<1x8x18xf32>,
    %128 = vector.extract_strided_slice %119 {offsets = [0, 40], sizes = [8, 18], strides = [1, 1]} : vector<8x360xf32> to vector<8x18xf32>
    %c1_99 = arith.constant 1 : index
    %c0_100 = arith.constant 0 : index
    %c36_101 = arith.constant 36 : index
    %129 = vector.load %arg6[%c1_99, %c0_100, %c36_101] : memref<2x8x324xf32, #tpu.memory_space<vmem>>, vector<1x8x18xf32>
    %130 = vector.shape_cast %129 : vector<1x8x18xf32> to vector<8x18xf32>
    %131 = vector.shape_cast %128 : vector<8x18xf32> to vector<1x8x18xf32>
    tpu.vector_store %arg6[%c1_99, %c0_100, %c36_101], %131 {strides = array<i32>} : memref<2x8x324xf32, #tpu.memory_space<vmem>>, vector<1x8x18xf32>,
    %132 = vector.extract_strided_slice %119 {offsets = [0, 60], sizes = [8, 18], strides = [1, 1]} : vector<8x360xf32> to vector<8x18xf32>
    %c1_102 = arith.constant 1 : index
    %c0_103 = arith.constant 0 : index
    %c54_104 = arith.constant 54 : index
    %133 = vector.load %arg6[%c1_102, %c0_103, %c54_104] : memref<2x8x324xf32, #tpu.memory_space<vmem>>, vector<1x8x18xf32>
    %134 = vector.shape_cast %133 : vector<1x8x18xf32> to vector<8x18xf32>
    %135 = vector.shape_cast %132 : vector<8x18xf32> to vector<1x8x18xf32>
    tpu.vector_store %arg6[%c1_102, %c0_103, %c54_104], %135 {strides = array<i32>} : memref<2x8x324xf32, #tpu.memory_space<vmem>>, vector<1x8x18xf32>,
    %136 = vector.extract_strided_slice %119 {offsets = [0, 80], sizes = [8, 18], strides = [1, 1]} : vector<8x360xf32> to vector<8x18xf32>
    %c1_105 = arith.constant 1 : index
    %c0_106 = arith.constant 0 : index
    %c72_107 = arith.constant 72 : index
    %137 = vector.load %arg6[%c1_105, %c0_106, %c72_107] : memref<2x8x324xf32, #tpu.memory_space<vmem>>, vector<1x8x18xf32>
    %138 = vector.shape_cast %137 : vector<1x8x18xf32> to vector<8x18xf32>
    %139 = vector.shape_cast %136 : vector<8x18xf32> to vector<1x8x18xf32>
    tpu.vector_store %arg6[%c1_105, %c0_106, %c72_107], %139 {strides = array<i32>} : memref<2x8x324xf32, #tpu.memory_space<vmem>>, vector<1x8x18xf32>,
    %140 = vector.extract_strided_slice %119 {offsets = [0, 100], sizes = [8, 18], strides = [1, 1]} : vector<8x360xf32> to vector<8x18xf32>
    %c1_108 = arith.constant 1 : index
    %c0_109 = arith.constant 0 : index
    %c90_110 = arith.constant 90 : index
    %141 = vector.load %arg6[%c1_108, %c0_109, %c90_110] : memref<2x8x324xf32, #tpu.memory_space<vmem>>, vector<1x8x18xf32>
    %142 = vector.shape_cast %141 : vector<1x8x18xf32> to vector<8x18xf32>
    %143 = vector.shape_cast %140 : vector<8x18xf32> to vector<1x8x18xf32>
    tpu.vector_store %arg6[%c1_108, %c0_109, %c90_110], %143 {strides = array<i32>} : memref<2x8x324xf32, #tpu.memory_space<vmem>>, vector<1x8x18xf32>,
    %144 = vector.extract_strided_slice %119 {offsets = [0, 120], sizes = [8, 18], strides = [1, 1]} : vector<8x360xf32> to vector<8x18xf32>
    %c1_111 = arith.constant 1 : index
    %c0_112 = arith.constant 0 : index
    %c108_113 = arith.constant 108 : index
    %145 = vector.load %arg6[%c1_111, %c0_112, %c108_113] : memref<2x8x324xf32, #tpu.memory_space<vmem>>, vector<1x8x18xf32>
    %146 = vector.shape_cast %145 : vector<1x8x18xf32> to vector<8x18xf32>
    %147 = vector.shape_cast %144 : vector<8x18xf32> to vector<1x8x18xf32>
    tpu.vector_store %arg6[%c1_111, %c0_112, %c108_113], %147 {strides = array<i32>} : memref<2x8x324xf32, #tpu.memory_space<vmem>>, vector<1x8x18xf32>,
    %148 = vector.extract_strided_slice %119 {offsets = [0, 140], sizes = [8, 18], strides = [1, 1]} : vector<8x360xf32> to vector<8x18xf32>
    %c1_114 = arith.constant 1 : index
    %c0_115 = arith.constant 0 : index
    %c126_116 = arith.constant 126 : index
    %149 = vector.load %arg6[%c1_114, %c0_115, %c126_116] : memref<2x8x324xf32, #tpu.memory_space<vmem>>, vector<1x8x18xf32>
    %150 = vector.shape_cast %149 : vector<1x8x18xf32> to vector<8x18xf32>
    %151 = vector.shape_cast %148 : vector<8x18xf32> to vector<1x8x18xf32>
    tpu.vector_store %arg6[%c1_114, %c0_115, %c126_116], %151 {strides = array<i32>} : memref<2x8x324xf32, #tpu.memory_space<vmem>>, vector<1x8x18xf32>,
    %152 = vector.extract_strided_slice %119 {offsets = [0, 160], sizes = [8, 18], strides = [1, 1]} : vector<8x360xf32> to vector<8x18xf32>
    %c1_117 = arith.constant 1 : index
    %c0_118 = arith.constant 0 : index
    %c144_119 = arith.constant 144 : index
    %153 = vector.load %arg6[%c1_117, %c0_118, %c144_119] : memref<2x8x324xf32, #tpu.memory_space<vmem>>, vector<1x8x18xf32>
    %154 = vector.shape_cast %153 : vector<1x8x18xf32> to vector<8x18xf32>
    %155 = vector.shape_cast %152 : vector<8x18xf32> to vector<1x8x18xf32>
    tpu.vector_store %arg6[%c1_117, %c0_118, %c144_119], %155 {strides = array<i32>} : memref<2x8x324xf32, #tpu.memory_space<vmem>>, vector<1x8x18xf32>,
    %156 = vector.extract_strided_slice %119 {offsets = [0, 180], sizes = [8, 18], strides = [1, 1]} : vector<8x360xf32> to vector<8x18xf32>
    %c1_120 = arith.constant 1 : index
    %c0_121 = arith.constant 0 : index
    %c162_122 = arith.constant 162 : index
    %157 = vector.load %arg6[%c1_120, %c0_121, %c162_122] : memref<2x8x324xf32, #tpu.memory_space<vmem>>, vector<1x8x18xf32>
    %158 = vector.shape_cast %157 : vector<1x8x18xf32> to vector<8x18xf32>
    %159 = vector.shape_cast %156 : vector<8x18xf32> to vector<1x8x18xf32>
    tpu.vector_store %arg6[%c1_120, %c0_121, %c162_122], %159 {strides = array<i32>} : memref<2x8x324xf32, #tpu.memory_space<vmem>>, vector<1x8x18xf32>,
    %160 = vector.extract_strided_slice %119 {offsets = [0, 200], sizes = [8, 18], strides = [1, 1]} : vector<8x360xf32> to vector<8x18xf32>
    %c1_123 = arith.constant 1 : index
    %c0_124 = arith.constant 0 : index
    %c180_125 = arith.constant 180 : index
    %161 = vector.load %arg6[%c1_123, %c0_124, %c180_125] : memref<2x8x324xf32, #tpu.memory_space<vmem>>, vector<1x8x18xf32>
    %162 = vector.shape_cast %161 : vector<1x8x18xf32> to vector<8x18xf32>
    %163 = vector.shape_cast %160 : vector<8x18xf32> to vector<1x8x18xf32>
    tpu.vector_store %arg6[%c1_123, %c0_124, %c180_125], %163 {strides = array<i32>} : memref<2x8x324xf32, #tpu.memory_space<vmem>>, vector<1x8x18xf32>,
    %164 = vector.extract_strided_slice %119 {offsets = [0, 220], sizes = [8, 18], strides = [1, 1]} : vector<8x360xf32> to vector<8x18xf32>
    %c1_126 = arith.constant 1 : index
    %c0_127 = arith.constant 0 : index
    %c198_128 = arith.constant 198 : index
    %165 = vector.load %arg6[%c1_126, %c0_127, %c198_128] : memref<2x8x324xf32, #tpu.memory_space<vmem>>, vector<1x8x18xf32>
    %166 = vector.shape_cast %165 : vector<1x8x18xf32> to vector<8x18xf32>
    %167 = vector.shape_cast %164 : vector<8x18xf32> to vector<1x8x18xf32>
    tpu.vector_store %arg6[%c1_126, %c0_127, %c198_128], %167 {strides = array<i32>} : memref<2x8x324xf32, #tpu.memory_space<vmem>>, vector<1x8x18xf32>,
    %168 = vector.extract_strided_slice %119 {offsets = [0, 240], sizes = [8, 18], strides = [1, 1]} : vector<8x360xf32> to vector<8x18xf32>
    %c1_129 = arith.constant 1 : index
    %c0_130 = arith.constant 0 : index
    %c216_131 = arith.constant 216 : index
    %169 = vector.load %arg6[%c1_129, %c0_130, %c216_131] : memref<2x8x324xf32, #tpu.memory_space<vmem>>, vector<1x8x18xf32>
    %170 = vector.shape_cast %169 : vector<1x8x18xf32> to vector<8x18xf32>
    %171 = vector.shape_cast %168 : vector<8x18xf32> to vector<1x8x18xf32>
    tpu.vector_store %arg6[%c1_129, %c0_130, %c216_131], %171 {strides = array<i32>} : memref<2x8x324xf32, #tpu.memory_space<vmem>>, vector<1x8x18xf32>,
    %172 = vector.extract_strided_slice %119 {offsets = [0, 260], sizes = [8, 18], strides = [1, 1]} : vector<8x360xf32> to vector<8x18xf32>
    %c1_132 = arith.constant 1 : index
    %c0_133 = arith.constant 0 : index
    %c234_134 = arith.constant 234 : index
    %173 = vector.load %arg6[%c1_132, %c0_133, %c234_134] : memref<2x8x324xf32, #tpu.memory_space<vmem>>, vector<1x8x18xf32>
    %174 = vector.shape_cast %173 : vector<1x8x18xf32> to vector<8x18xf32>
    %175 = vector.shape_cast %172 : vector<8x18xf32> to vector<1x8x18xf32>
    tpu.vector_store %arg6[%c1_132, %c0_133, %c234_134], %175 {strides = array<i32>} : memref<2x8x324xf32, #tpu.memory_space<vmem>>, vector<1x8x18xf32>,
    %176 = vector.extract_strided_slice %119 {offsets = [0, 280], sizes = [8, 18], strides = [1, 1]} : vector<8x360xf32> to vector<8x18xf32>
    %c1_135 = arith.constant 1 : index
    %c0_136 = arith.constant 0 : index
    %c252_137 = arith.constant 252 : index
    %177 = vector.load %arg6[%c1_135, %c0_136, %c252_137] : memref<2x8x324xf32, #tpu.memory_space<vmem>>, vector<1x8x18xf32>
    %178 = vector.shape_cast %177 : vector<1x8x18xf32> to vector<8x18xf32>
    %179 = vector.shape_cast %176 : vector<8x18xf32> to vector<1x8x18xf32>
    tpu.vector_store %arg6[%c1_135, %c0_136, %c252_137], %179 {strides = array<i32>} : memref<2x8x324xf32, #tpu.memory_space<vmem>>, vector<1x8x18xf32>,
    %180 = vector.extract_strided_slice %119 {offsets = [0, 300], sizes = [8, 18], strides = [1, 1]} : vector<8x360xf32> to vector<8x18xf32>
    %c1_138 = arith.constant 1 : index
    %c0_139 = arith.constant 0 : index
    %c270_140 = arith.constant 270 : index
    %181 = vector.load %arg6[%c1_138, %c0_139, %c270_140] : memref<2x8x324xf32, #tpu.memory_space<vmem>>, vector<1x8x18xf32>
    %182 = vector.shape_cast %181 : vector<1x8x18xf32> to vector<8x18xf32>
    %183 = vector.shape_cast %180 : vector<8x18xf32> to vector<1x8x18xf32>
    tpu.vector_store %arg6[%c1_138, %c0_139, %c270_140], %183 {strides = array<i32>} : memref<2x8x324xf32, #tpu.memory_space<vmem>>, vector<1x8x18xf32>,
    %184 = vector.extract_strided_slice %119 {offsets = [0, 320], sizes = [8, 18], strides = [1, 1]} : vector<8x360xf32> to vector<8x18xf32>
    %c1_141 = arith.constant 1 : index
    %c0_142 = arith.constant 0 : index
    %c288_143 = arith.constant 288 : index
    %185 = vector.load %arg6[%c1_141, %c0_142, %c288_143] : memref<2x8x324xf32, #tpu.memory_space<vmem>>, vector<1x8x18xf32>
    %186 = vector.shape_cast %185 : vector<1x8x18xf32> to vector<8x18xf32>
    %187 = vector.shape_cast %184 : vector<8x18xf32> to vector<1x8x18xf32>
    tpu.vector_store %arg6[%c1_141, %c0_142, %c288_143], %187 {strides = array<i32>} : memref<2x8x324xf32, #tpu.memory_space<vmem>>, vector<1x8x18xf32>,
    %188 = vector.extract_strided_slice %119 {offsets = [0, 340], sizes = [8, 18], strides = [1, 1]} : vector<8x360xf32> to vector<8x18xf32>
    %c1_144 = arith.constant 1 : index
    %c0_145 = arith.constant 0 : index
    %c306_146 = arith.constant 306 : index
    %189 = vector.load %arg6[%c1_144, %c0_145, %c306_146] : memref<2x8x324xf32, #tpu.memory_space<vmem>>, vector<1x8x18xf32>
    %190 = vector.shape_cast %189 : vector<1x8x18xf32> to vector<8x18xf32>
    %191 = vector.shape_cast %188 : vector<8x18xf32> to vector<1x8x18xf32>
    tpu.vector_store %arg6[%c1_144, %c0_145, %c306_146], %191 {strides = array<i32>} : memref<2x8x324xf32, #tpu.memory_space<vmem>>, vector<1x8x18xf32>,
    %c0_147 = arith.constant 0 : index
    %c0_148 = arith.constant 0 : index
    %c0_149 = arith.constant 0 : index
    %192 = vector.load %arg6[%c0_147, %c0_148, %c0_149] : memref<2x8x324xf32, #tpu.memory_space<vmem>>, vector<1x8x324xf32>
    %193 = vector.shape_cast %192 : vector<1x8x324xf32> to vector<8x324xf32>
    %c1_150 = arith.constant 1 : index
    %c0_151 = arith.constant 0 : index
    %c0_152 = arith.constant 0 : index
    %194 = vector.load %arg6[%c1_150, %c0_151, %c0_152] : memref<2x8x324xf32, #tpu.memory_space<vmem>>, vector<1x8x324xf32>
    %195 = vector.shape_cast %194 : vector<1x8x324xf32> to vector<8x324xf32>
    %196 = arith.addf %193, %195 : vector<8x324xf32>
    %cst_153 = arith.constant dense<0.000000e+00> : vector<8xf32>
    %197 = vector.multi_reduction <add>, %196, %cst_153 [1] : vector<8x324xf32> to vector<8xf32>
    %198 = vector.shape_cast %197 : vector<8xf32> to vector<8x1xf32>
    %cst_154 = arith.constant 0.00154320989 : f32
    %199 = vector.broadcast %cst_154 : f32 to vector<8x1xf32>
    %200 = arith.mulf %198, %199 : vector<8x1xf32>
    %cst_155 = arith.constant 0.000000e+00 : f32
    %201 = vector.broadcast %cst_155 : f32 to vector<8x1xf32>
    %c0_156 = arith.constant 0 : index
    %c0_157 = arith.constant 0 : index
    %c0_158 = arith.constant 0 : index
    %202 = vector.load %arg6[%c0_156, %c0_157, %c0_158] : memref<2x8x324xf32, #tpu.memory_space<vmem>>, vector<1x8x324xf32>
    %203 = vector.shape_cast %202 : vector<1x8x324xf32> to vector<8x324xf32>
    %204 = vector.broadcast %200 : vector<8x1xf32> to vector<8x324xf32>
    %205 = arith.subf %203, %204 : vector<8x324xf32>
    %206 = arith.mulf %205, %205 : vector<8x324xf32>
    %cst_159 = arith.constant dense<0.000000e+00> : vector<8xf32>
    %207 = vector.multi_reduction <add>, %206, %cst_159 [1] : vector<8x324xf32> to vector<8xf32>
    %208 = vector.shape_cast %207 : vector<8xf32> to vector<8x1xf32>
    %209 = arith.addf %201, %208 : vector<8x1xf32>
    %c1_160 = arith.constant 1 : index
    %c0_161 = arith.constant 0 : index
    %c0_162 = arith.constant 0 : index
    %210 = vector.load %arg6[%c1_160, %c0_161, %c0_162] : memref<2x8x324xf32, #tpu.memory_space<vmem>>, vector<1x8x324xf32>
    %211 = vector.shape_cast %210 : vector<1x8x324xf32> to vector<8x324xf32>
    %212 = vector.broadcast %200 : vector<8x1xf32> to vector<8x324xf32>
    %213 = arith.subf %211, %212 : vector<8x324xf32>
    %214 = arith.mulf %213, %213 : vector<8x324xf32>
    %cst_163 = arith.constant dense<0.000000e+00> : vector<8xf32>
    %215 = vector.multi_reduction <add>, %214, %cst_163 [1] : vector<8x324xf32> to vector<8xf32>
    %216 = vector.shape_cast %215 : vector<8xf32> to vector<8x1xf32>
    %217 = arith.addf %209, %216 : vector<8x1xf32>
    %c0_164 = arith.constant 0 : index
    %c0_165 = arith.constant 0 : index
    %218 = vector.load %arg4[%c0_164, %c0_165] : memref<8x1xf32, #tpu.memory_space<vmem>>, vector<8x1xf32>
    %cst_166 = arith.constant 0.00154320989 : f32
    %219 = vector.broadcast %cst_166 : f32 to vector<8x1xf32>
    %220 = arith.mulf %217, %219 : vector<8x1xf32>
    %cst_167 = arith.constant 9.99999974E-6 : f32
    %221 = vector.broadcast %cst_167 : f32 to vector<8x1xf32>
    %222 = arith.addf %220, %221 : vector<8x1xf32>
    %223 = math.rsqrt %222 : vector<8x1xf32>
    %224 = arith.mulf %218, %223 : vector<8x1xf32>
    %c0_168 = arith.constant 0 : index
    %c0_169 = arith.constant 0 : index
    %225 = vector.load %arg5[%c0_168, %c0_169] : memref<8x1xf32, #tpu.memory_space<vmem>>, vector<8x1xf32>
    %226 = arith.mulf %200, %224 : vector<8x1xf32>
    %227 = arith.subf %225, %226 : vector<8x1xf32>
    %c0_170 = arith.constant 0 : index
    %c0_171 = arith.constant 0 : index
    %c0_172 = arith.constant 0 : index
    %228 = vector.load %arg6[%c0_170, %c0_171, %c0_172] : memref<2x8x324xf32, #tpu.memory_space<vmem>>, vector<1x8x324xf32>
    %229 = vector.shape_cast %228 : vector<1x8x324xf32> to vector<8x324xf32>
    %230 = vector.broadcast %224 : vector<8x1xf32> to vector<8x324xf32>
    %231 = arith.mulf %229, %230 : vector<8x324xf32>
    %232 = vector.broadcast %227 : vector<8x1xf32> to vector<8x324xf32>
    %233 = arith.addf %231, %232 : vector<8x324xf32>
    %c0_173 = arith.constant 0 : index
    %c0_174 = arith.constant 0 : index
    %c0_175 = arith.constant 0 : index
    %234 = vector.load %arg6[%c0_173, %c0_174, %c0_175] : memref<2x8x324xf32, #tpu.memory_space<vmem>>, vector<1x8x324xf32>
    %235 = vector.shape_cast %234 : vector<1x8x324xf32> to vector<8x324xf32>
    %236 = vector.shape_cast %233 : vector<8x324xf32> to vector<1x8x324xf32>
    tpu.vector_store %arg6[%c0_173, %c0_174, %c0_175], %236 {strides = array<i32>} : memref<2x8x324xf32, #tpu.memory_space<vmem>>, vector<1x8x324xf32>,
    %c1_176 = arith.constant 1 : index
    %c0_177 = arith.constant 0 : index
    %c0_178 = arith.constant 0 : index
    %237 = vector.load %arg6[%c1_176, %c0_177, %c0_178] : memref<2x8x324xf32, #tpu.memory_space<vmem>>, vector<1x8x324xf32>
    %238 = vector.shape_cast %237 : vector<1x8x324xf32> to vector<8x324xf32>
    %239 = vector.broadcast %224 : vector<8x1xf32> to vector<8x324xf32>
    %240 = arith.mulf %238, %239 : vector<8x324xf32>
    %241 = vector.broadcast %227 : vector<8x1xf32> to vector<8x324xf32>
    %242 = arith.addf %240, %241 : vector<8x324xf32>
    %c1_179 = arith.constant 1 : index
    %c0_180 = arith.constant 0 : index
    %c0_181 = arith.constant 0 : index
    %243 = vector.load %arg6[%c1_179, %c0_180, %c0_181] : memref<2x8x324xf32, #tpu.memory_space<vmem>>, vector<1x8x324xf32>
    %244 = vector.shape_cast %243 : vector<1x8x324xf32> to vector<8x324xf32>
    %245 = vector.shape_cast %242 : vector<8x324xf32> to vector<1x8x324xf32>
    tpu.vector_store %arg6[%c1_179, %c0_180, %c0_181], %245 {strides = array<i32>} : memref<2x8x324xf32, #tpu.memory_space<vmem>>, vector<1x8x324xf32>,
    return
  }
  func.func @transform_0(%arg0: i32) -> (i32, i32, i32) {
    %c0_i32 = arith.constant 0 : i32
    %c0_i32_0 = arith.constant 0 : i32
    %c0_i32_1 = arith.constant 0 : i32
    %c0_i32_2 = arith.constant 0 : i32
    return %c0_i32, %c0_i32_0, %c0_i32_1 : i32, i32, i32
  }
  func.func @transform_1(%arg0: i32) -> (i32, i32) {
    %c0_i32 = arith.constant 0 : i32
    %c0_i32_0 = arith.constant 0 : i32
    %c0_i32_1 = arith.constant 0 : i32
    return %c0_i32, %c0_i32_0 : i32, i32
  }
  func.func @transform_2(%arg0: i32) -> (i32, i32) {
    %c0_i32 = arith.constant 0 : i32
    %c0_i32_0 = arith.constant 0 : i32
    %c0_i32_1 = arith.constant 0 : i32
    return %c0_i32, %c0_i32_0 : i32, i32
  }
  func.func @transform_3(%arg0: i32) -> (i32, i32) {
    %c0_i32 = arith.constant 0 : i32
    %c0_i32_0 = arith.constant 0 : i32
    %c0_i32_1 = arith.constant 0 : i32
    return %c0_i32, %c0_i32_0 : i32, i32
  }
  func.func @transform_4(%arg0: i32) -> (i32, i32) {
    %c0_i32 = arith.constant 0 : i32
    %c0_i32_0 = arith.constant 0 : i32
    %c0_i32_1 = arith.constant 0 : i32
    return %c0_i32, %c0_i32_0 : i32, i32
  }
  func.func @transform_5(%arg0: i32) -> (i32, i32, i32) {
    %c0_i32 = arith.constant 0 : i32
    %c0_i32_0 = arith.constant 0 : i32
    %c0_i32_1 = arith.constant 0 : i32
    %c0_i32_2 = arith.constant 0 : i32
    return %c0_i32, %c0_i32_0, %c0_i32_1 : i32, i32, i32
  }
}

</mosaic_0001>

<bundles_post_ra>
// kernel: fac_conv_forward.1
= control target key start
LH: loop header
LB: loop body
LE: loop exit
PB: predicated region body
PF: predicated region fallthrough
CT: control target
= control target key end

     0   :  { %v1284_v4 = vmov 0.0|0.0   ;;  %vm44_vm0 = vcmask 519168   ;;  %s1285_s22 = smov 88   ;;  %s1286_s23 = smov 108   ;;  %v1287_v9 = vmov 0.0   ;;  %vm1288_vm1 = vmmov 0   ;;  %s1762_s0 = inlined_call_operand.vmem [shape: f32[2,4,360], index: 0, kind: input, shape index: {}]   ;;  %s1763_s1 = inlined_call_operand.vmem [shape: f32[4,12], index: 1, kind: input, shape index: {}]   ;;  %s1764_s2 = inlined_call_operand.vmem [shape: f32[8,12], index: 2, kind: input, shape index: {}]   ;;  %s1765_s5 = inlined_call_operand.vmem [shape: f32[2,8,324], index: 5, kind: output, shape index: {}]   ;;  %s1766_s3 = inlined_call_operand.vmem [shape: f32[8,1], index: 3, kind: input, shape index: {}]   ;;  %s1767_s4 = inlined_call_operand.vmem [shape: f32[8,1], index: 4, kind: input, shape index: {}]  }
   0x1   :  { %v35_v0 = vld [vmem:[%s1762_s0 + $0x8] sm:$0xf]  ;;  %v34_v1 = vld [vmem:[%s1762_s0] sm:$0xff]  ;;  %1220 = vmatprep.subr.bf16.mxu1 %v1284_v4  ;;  %v1133_v8 = vld [vmem:[%s1762_s0 + $0xc] sm:$0xff]  ;;  %163 = vmatprep.mubr.f32.mxu0 %v1287_v9  ;;  %vm54_vm2 = vcmask 883712   ;;  %vm62_vm3 = vcmask 523268  }
   0x2   :  { %v37_v2 = vmax.f32 %v35_v0, 0.0  ;;  %v36_v3 = vmax.f32 %v34_v1, 0.0  ;;  %v1356_v10 = vmax.f32 %v1133_v8, 0.0  ;;  %v1134_v11 = vld [vmem:[%s1762_s0 + $0x14] sm:$0xf]  ;;  %1190 = vmatprep.mubr.msk.f32.mxu1 %vm1288_vm1, %v1287_v9  ;;  %vm70_vm4 = vcmask 719872  }
   0x3   :  { %v561_v12 = vmax.f32 %v1134_v11, 0.0  ;;  %vm89_vm5 = vcmask 1043456   ;;  %vm1289_vm6 = vmmov 1   ;;  %v1394_v35 = vld [vmem:[%s1763_s1] sm:$0xf]  ;;  %vm85_vm8 = vcmask 97280  }
   0x4   :  { %68 = vrot.lane.b32.xlu1 %v37_v2, %s1285_s22  ;;  %50 = vrot.lane.b32.xlu0 %v36_v3, %s1286_s23  ;;  %42 = vst [vmem:[#allocation2] sm:$0xf] %v36_v3  ;;  %v47_v5 = vcombine.low %v37_v2, %v37_v2  ;;  %v40_v6 = vcombine.high %v36_v3, %v36_v3  ;;  %45 = vst.msk [vmem:[#allocation2 + $0x10] sm:$0xf] %vm44_vm0, %v37_v2  ;;  %vm22_vm9 = vcmask 158720   ;;  %vm30_vm10 = vcmask 142336  }
   0x5   :  { %v46_v7 = vcombine.low %v36_v3, %v36_v3  ;;  %v564_v13 = vcombine.high %v1356_v10, %v1356_v10  ;;  %v570_v14 = vcombine.low %v561_v12, %v561_v12  ;;  %v569_v15 = vcombine.low %v1356_v10, %v1356_v10  ;;  %vm1381_vm7 = vmpackc.low %vm89_vm5, %vm1289_vm6  ;;  %23 = vst.msk [vmem:[#allocation3] sm:$0xf] %vm22_vm9, %v1287_v9  ;;  %s1290_s1 = smov 20   ;;  %s1291_s29 = smov 18  }
   0x6   :  { %43 = vst [vmem:[#allocation2 + $0x8] sm:$0xf] %v40_v6  ;;  %31 = vst.msk [vmem:[#allocation3 + $0x18] sm:$0xf] %vm30_vm10, %v1287_v9  ;;  %vm26_vm11 = vcmask 154628   ;;  %vm24_vm12 = vcmask 847520  }
   0x7   :  { %27 = vst.msk [vmem:[#allocation3] sm:$0xf0] %vm26_vm11, %v1287_v9  ;;  %vm32_vm13 = vcmask 847504   ;;  %vm28_vm14 = vcmask 851612   ;;  %s1292_s30 = smov 19   ;;  %vm255_vm15 = vcmask 1043616  }
   0x8   :  { %52 = vrot.lane.b32.xlu0 %v47_v5, %s1286_s23  ;;  %66 = vrot.lane.b32.xlu1 %v40_v6, %s1285_s22  ;;  %25 = vst.msk [vmem:[#allocation3 + $0x10] sm:$0xf] %vm24_vm12, %v1287_v9  ;;  %vm275_vm5 = vcmask 1047708   ;;  %vm269_vm6 = vcmask 154624   ;;  %vm258_vm9 = vcmask 683008   ;;  %vm295_vm10 = vcmask 666624  }
   0x9   :  { %33 = vst.msk [vmem:[#allocation3 + $0x28] sm:$0xf] %vm32_vm13, %v1287_v9  ;;  %vm278_vm11 = vcmask 678916   ;;  %s1293_s9 = smov 114   ;;  %s1294_s10 = smov 112   ;;  %vm461_vm12 = vcmask 294032  }
   0xa   :  { %29 = vst.msk [vmem:[#allocation3 + $0x10] sm:$0xf0] %vm28_vm14, %v1287_v9  ;;  %s1295_s11 = smov 126   ;;  %s1296_s12 = smov 110   ;;  %vm508_vm13 = vcmask 425232   ;;  %vm466_vm14 = vcmask 441632  }
   0xb   :  { %s1297_s13 = smov 124   ;;  %s1298_s14 = smov 122  }
   0xc   :  { %48 = vrot.lane.b32.xlu0 %v46_v7, %s1286_s23  ;;  %64 = vrot.lane.b32.xlu1 %v36_v3, %s1285_s22  ;;  %s1299_s15 = smov 106   ;;  %s1300_s16 = smov 120  }
   0xd   :  { %s1301_s17 = smov 104   ;;  %s1302_s18 = smov 116  }
   0xe   :  { %s1303_s19 = smov 118   ;;  %s1304_s20 = smov 100  }
   0xf   :  { %s1305_s21 = smov 98   ;;  %s1307_s24 = smov 96  }
  0x10   :  { %573 = vrot.lane.b32.xlu0 %v1356_v10, %s1286_s23  ;;  %575 = vrot.lane.b32.xlu1 %v570_v14, %s1286_s23 }
  0x14   :  { %587 = vrot.lane.b32.xlu0 %v564_v13, %s1285_s22  ;;  %589 = vrot.lane.b32.xlu1 %v561_v12, %s1285_s22 }
  0x18   :  { %571 = vrot.lane.b32.xlu0 %v569_v15, %s1286_s23 }
  0x76   :  { %v69_v16 = vpop.permute.xlu1 %68  ;;  %v51_v17 = vpop.permute.xlu0 %50 }
  0x77   :  { %78 = vst.msk [vmem:[#allocation2 + $0x28] sm:$0xf] %vm44_vm0, %v69_v16 }
  0x7a   :  { %v53_v18 = vpop.permute.xlu0 %52  ;;  %v67_v19 = vpop.permute.xlu1 %66 }
  0x7b   :  { %v56_v20 = vsel %vm54_vm2, %v51_v17, %v53_v18  ;;  %63 = vst.msk [vmem:[#allocation2 + $0x10] sm:$0xf0] %vm62_vm3, %v53_v18  ;;  %v72_v21 = vsel %vm70_vm4, %v67_v19, %v69_v16  ;;  %v1452_v16 = vld [vmem:[%s1764_s2] sm:$0xff] }
  0x7c   :  { %61 = vst [vmem:[#allocation2 + $0x8] sm:$0xf0] %v56_v20  ;;  %77 = vst [vmem:[#allocation2 + $0x20] sm:$0xf] %v72_v21 }
  0x7e   :  { %v49_v22 = vpop.permute.xlu0 %48  ;;  %v65_v23 = vpop.permute.xlu1 %64  ;;  %v84_v27 = vld [vmem:[#allocation2 + $0x28] sm:$0xf] }
  0x7f   :  { %v55_v24 = vsel %vm54_vm2, %v49_v22, %v51_v17  ;;  %v71_v25 = vsel %vm70_vm4, %v65_v23, %v67_v19 }
  0x80   :  { %60 = vst [vmem:[#allocation2] sm:$0xf0] %v55_v24  ;;  %76 = vst [vmem:[#allocation2 + $0x18] sm:$0xf] %v71_v25 }
  0x82   :  { %v81_v26 = vld [vmem:[#allocation2 + $0x10] sm:$0xff]  ;;  %v574_v37 = vpop.permute.xlu0 %573  ;;  %v576_v38 = vpop.permute.xlu1 %575 }
  0x83   :  { %v1221_v29 = vpack.c.bf16 %v84_v27, %v81_v26  ;;  %v80_v30 = vld [vmem:[#allocation2 + $0x8] sm:$0xff]  ;;  %v83_v31 = vld [vmem:[#allocation2 + $0x20] sm:$0xf]  ;;  %568 = vst.msk [vmem:[#allocation2 + $0x10] sm:$0xf] %vm44_vm0, %v561_v12  ;;  %v578_v39 = vsel %vm54_vm2, %v574_v37, %v576_v38 }
  0x84   :  { %v1214_v32 = vpack.c.bf16 %v83_v31, %v80_v30  ;;  %567 = vst [vmem:[#allocation2 + $0x8] sm:$0xf] %v564_v13  ;;  %584 = vst.msk [vmem:[#allocation2 + $0x10] sm:$0xf0] %vm62_vm3, %v576_v38  ;;  %vm286_vm3 = vcmask 146432  }
  0x85   :  { %1223 = vmatpush3.bf16.msk.msra.mxu1 %vm1381_vm7, %v1221_v29  ;;  %583 = vst [vmem:[#allocation2 + $0x8] sm:$0xf0] %v578_v39 }
  0x86   :  { %1216 = vmatprep.subr.msk.bf16.mxu0 %vm1381_vm7, %v1214_v32  ;;  %1230 = vmatprep.subr.bf16.mxu1 %v1284_v4  ;;  %v1409_v40 = vpop.permute.xlu0 %587  ;;  %v590_v41 = vpop.permute.xlu1 %589 }
  0x87   :  { %v79_v33 = vld [vmem:[#allocation2] sm:$0xff]  ;;  %v82_v34 = vld [vmem:[#allocation2 + $0x18] sm:$0xf]  ;;  %v592_v42 = vsel %vm70_vm4, %v1409_v40, %v590_v41  ;;  %598 = vst.msk [vmem:[#allocation2 + $0x28] sm:$0xf] %vm44_vm0, %v590_v41  ;;  %vm249_vm0 = vcmask 162816  }
  0x88   :  { %v1217_v36 = vpack.c.bf16 %v82_v34, %v79_v33  ;;  %566 = vst [vmem:[#allocation2] sm:$0xf] %v1356_v10  ;;  %1191 = vmatmul.mubr.msk.f32.vlgmr.msra.gmra.mrb[0].mxu1 %vm85_vm8, %v1394_v35  ;;  %597 = vst [vmem:[#allocation2 + $0x20] sm:$0xf] %v592_v42 }
  0x89   :  { %1197 = vmatprep.mubr.msk.f32.mxu1 %vm1288_vm1, %v1287_v9 }
  0x8a   :  { %1219 = vmatpush1.bf16.msk.msra.mxu0 %vm1381_vm7, %v1217_v36  ;;  %v572_v43 = vpop.permute.xlu0 %571 }
  0x8b   :  { %v577_v44 = vsel %vm54_vm2, %v572_v43, %v574_v37  ;;  %vm292_vm2 = vcmask 1043600   ;;  %v601_v23 = vld [vmem:[#allocation2 + $0x10] sm:$0xff] }
  0x8c   :  { %582 = vst [vmem:[#allocation2] sm:$0xf0] %v577_v44  ;;  %v600_v6 = vld [vmem:[#allocation2 + $0x8] sm:$0xff] }
  0x8d   :  { %1125 = vmatmul.mubr.msk.f32.vlgmr.msra.gmra.mrb[0].mxu0 %vm85_vm8, %v1394_v35 }
  0x8e   :  { %379 = vmatprep.mubr.f32.mxu0 %v1287_v9  ;;  %v604_v24 = vld [vmem:[#allocation2 + $0x28] sm:$0xf] }
  0x8f   :  { %v603_v11 = vld [vmem:[#allocation2 + $0x20] sm:$0xf]  ;;  %v1241_v25 = vpack.c.bf16 %v604_v24, %v601_v23 }
  0x90   :  { %v1234_v15 = vpack.c.bf16 %v603_v11, %v600_v6 }
  0x93   :  { %v599_v17 = vld [vmem:[#allocation2] sm:$0xff] }
 0x15b   :  { %v236_v45 = vpop.f32.mrb[0].mxu1 }
 0x15c   :  { %v1192_v46 = vpop.f32.mrb[1].mxu1  ;;  %v262_v51 = vrot.slane %v236_v45, 4 }
 0x160   :  { %v165_v47 = vpop.f32.mrb[0].mxu0 }
 0x161   :  { %243 = vrot.lane.b32.xlu0 %v165_v47, %s1290_s1  ;;  %v167_v48 = vpop.f32.mrb[1].mxu0  ;;  %v260_v49 = vrot.slane %v165_v47, 4 }
 0x162   :  { %245 = vrot.lane.b32.xlu1 %v167_v48, %s1290_s1  ;;  %v261_v50 = vrot.slane %v167_v48, 4 }
 0x165   :  { %280 = vrot.lane.b32.xlu0 %v165_v47, %s1291_s29 }
 0x166   :  { %282 = vrot.lane.b32.xlu1 %v167_v48, %s1291_s29 }
 0x169   :  { %263 = vrot.lane.b32.xlu0 %v260_v49, %s1292_s30 }
 0x16a   :  { %265 = vrot.lane.b32.xlu1 %v261_v50, %s1292_s30 }
 0x16d   :  { %247 = vrot.lane.b32.xlu0 %v236_v45, %s1290_s1 }
 0x16e   :  { %585 = vrot.lane.b32.xlu1 %v1356_v10, %s1285_s22  ;;  %s1306_s22 = smov 102  }
 0x171   :  { %284 = vrot.lane.b32.xlu0 %v236_v45, %s1291_s29 }
 0x172   :  { %267 = vrot.lane.b32.xlu1 %v262_v51, %s1292_s30 }
 0x1d3   :  { %v244_v52 = vpop.permute.xlu0 %243 }
 0x1d4   :  { %256 = vst.msk [vmem:[#allocation3] sm:$0xf] %vm255_vm15, %v244_v52  ;;  %v246_v53 = vpop.permute.xlu1 %245 }
 0x1d5   :  { %v250_v54 = vsel %vm249_vm0, %v244_v52, %v246_v53 }
 0x1d6   :  { %257 = vst [vmem:[#allocation3 + $0x8] sm:$0xf] %v250_v54 }
 0x1d7   :  { %v281_v55 = vpop.permute.xlu0 %280 }
 0x1d8   :  { %293 = vst.msk [vmem:[#allocation3 + $0x18] sm:$0xf] %vm292_vm2, %v281_v55  ;;  %v283_v56 = vpop.permute.xlu1 %282 }
 0x1d9   :  { %v287_v57 = vsel %vm286_vm3, %v281_v55, %v283_v56 }
 0x1da   :  { %294 = vst [vmem:[#allocation3 + $0x20] sm:$0xf] %v287_v57 }
 0x1db   :  { %v264_v58 = vpop.permute.xlu0 %263 }
 0x1dc   :  { %276 = vst.msk [vmem:[#allocation3] sm:$0xf0] %vm275_vm5, %v264_v58  ;;  %v266_v59 = vpop.permute.xlu1 %265 }
 0x1dd   :  { %v270_v60 = vsel %vm269_vm6, %v264_v58, %v266_v59 }
 0x1de   :  { %277 = vst [vmem:[#allocation3 + $0x8] sm:$0xf0] %v270_v60 }
 0x1df   :  { %v248_v61 = vpop.permute.xlu0 %247  ;;  %v300_v13 = vld [vmem:[#allocation3 + $0x18] sm:$0xf] }
 0x1e0   :  { %v251_v62 = vsel %vm249_vm0, %v246_v53, %v248_v61  ;;  %v586_v63 = vpop.permute.xlu1 %585 }
 0x1e1   :  { %259 = vst.msk [vmem:[#allocation3 + $0x10] sm:$0xf] %vm258_vm9, %v251_v62  ;;  %v591_v0 = vsel %vm70_vm4, %v586_v63, %v1409_v40  ;;  %v301_v10 = vld [vmem:[#allocation3 + $0x20] sm:$0xf]  ;;  %vm503_vm4 = vcmask 277632  }
 0x1e2   :  { %596 = vst [vmem:[#allocation2 + $0x18] sm:$0xf] %v591_v0 }
 0x1e3   :  { %v285_v1 = vpop.permute.xlu0 %284  ;;  %v297_v5 = vld [vmem:[#allocation3] sm:$0xff] }
 0x1e4   :  { %v288_v2 = vsel %vm286_vm3, %v283_v56, %v285_v1  ;;  %v268_v3 = vpop.permute.xlu1 %267  ;;  %v1227_v14 = vpack.c.bf16 %v300_v13, %v297_v5 }
 0x1e5   :  { %296 = vst.msk [vmem:[#allocation3 + $0x28] sm:$0xf] %vm295_vm10, %v288_v2  ;;  %v271_v7 = vsel %vm269_vm6, %v266_v59, %v268_v3  ;;  %v298_v8 = vld [vmem:[#allocation3 + $0x8] sm:$0xff] }
 0x1e6   :  { %279 = vst.msk [vmem:[#allocation3 + $0x10] sm:$0xf0] %vm278_vm11, %v271_v7  ;;  %v1224_v12 = vpack.c.bf16 %v301_v10, %v298_v8 }
 0x1e8   :  { %1226 = vmatprep.subr.msk.bf16.mxu0 %vm1381_vm7, %v1224_v12 }
 0x1e9   :  { %1229 = vmatpush1.bf16.msk.msra.mxu0 %vm1381_vm7, %v1227_v14  ;;  %v602_v18 = vld [vmem:[#allocation2 + $0x18] sm:$0xf] }
 0x1ea   :  { %1236 = vmatprep.subr.msk.bf16.mxu0 %vm1381_vm7, %v1234_v15  ;;  %v1237_v19 = vpack.c.bf16 %v602_v18, %v599_v17 }
 0x1ec   :  { %1130 = vmatmul.mubr.msk.f32.vlgmr.msra.gmra.mrb[2].mxu0 %vm85_vm8, %v1452_v16  ;;  %v302_v20 = vld [vmem:[#allocation3 + $0x28] sm:$0xf] }
 0x1ed   :  { %1239 = vmatpush1.bf16.msk.msra.mxu0 %vm1381_vm7, %v1237_v19  ;;  %678 = vmatprep.mubr.f32.mxu0 %v1287_v9  ;;  %v299_v21 = vld [vmem:[#allocation3 + $0x10] sm:$0xff] }
 0x1ee   :  { %v1231_v22 = vpack.c.bf16 %v302_v20, %v299_v21 }
 0x1f0   :  { %1233 = vmatpush3.bf16.msk.msra.mxu1 %vm1381_vm7, %v1231_v22  ;;  %1137 = vmatmul.mubr.msk.f32.vlgmr.msra.gmra.mrb[4].mxu0 %vm85_vm8, %v1394_v35 }
 0x1f1   :  { %1240 = vmatprep.subr.bf16.mxu1 %v1284_v4  ;;  %882 = vmatprep.mubr.f32.mxu0 %v1287_v9 }
 0x1f3   :  { %1198 = vmatmul.mubr.msk.f32.vlgmr.msra.gmra.mrb[2].mxu1 %vm85_vm8, %v1452_v16 }
 0x1f4   :  { %1243 = vmatpush3.bf16.msk.msra.mxu1 %vm1381_vm7, %v1241_v25  ;;  %1204 = vmatprep.mubr.msk.f32.mxu1 %vm1288_vm1, %v1287_v9 }
 0x1f5   :  { %1250 = vmatprep.subr.bf16.mxu1 %v1284_v4 }
 0x1f7   :  { %1205 = vmatmul.mubr.msk.f32.vlgmr.msra.gmra.mrb[4].mxu1 %vm85_vm8, %v1394_v35 }
 0x1f8   :  { %1211 = vmatprep.mubr.msk.f32.mxu1 %vm1288_vm1, %v1287_v9  ;;  %vm498_vm1 = vcmask 130048  }
 0x2bf   :  { %v381_v26 = vpop.f32.mrb[2].mxu0 }
 0x2c0   :  { %v383_v27 = vpop.f32.mrb[3].mxu0  ;;  %456 = vst.msk [vmem:[%s1765_s5] sm:$0xff] %vm286_vm3, %v381_v26 }
 0x2c3   :  { %v680_v29 = vpop.f32.mrb[4].mxu0 }
 0x2c4   :  { %758 = vrot.lane.b32.xlu1 %v680_v29, %s1290_s1  ;;  %v682_v30 = vpop.f32.mrb[5].mxu0  ;;  %v772_v9 = vrot.slane %v680_v29, 4 }
 0x2c5   :  { %760 = vrot.lane.b32.xlu0 %v682_v30, %s1290_s1  ;;  %v773_v31 = vrot.slane %v682_v30, 4 }
 0x2c6   :  { %v1484_v4 = vpop.f32.mrb[2].mxu1 }
 0x2c7   :  { %v1199_v32 = vpop.f32.mrb[3].mxu1 }
 0x2c8   :  { %789 = vrot.lane.b32.xlu1 %v680_v29, %s1291_s29 }
 0x2c9   :  { %777 = vrot.lane.b32.xlu0 %v773_v31, %s1292_s30 }
 0x2ca   :  { %v751_v33 = vpop.f32.mrb[4].mxu1 }
 0x2cb   :  { %v1206_v34 = vpop.f32.mrb[5].mxu1  ;;  %v774_v35 = vrot.slane %v751_v33, 4 }
 0x2cc   :  { %775 = vrot.lane.b32.xlu1 %v772_v9, %s1292_s30 }
 0x2cd   :  { %791 = vrot.lane.b32.xlu0 %v682_v30, %s1291_s29 }
 0x2d0   :  { %762 = vrot.lane.b32.xlu1 %v751_v33, %s1290_s1 }
 0x2d1   :  { %779 = vrot.lane.b32.xlu0 %v774_v35, %s1292_s30 }
 0x2d4   :  { %793 = vrot.lane.b32.xlu1 %v751_v33, %s1291_s29 }
 0x2d5   :  { %493 = vrot.lane.b32.xlu0 %v383_v27, %s1293_s9 }
 0x2d8   :  { %500 = vrot.lane.b32.xlu1 %v383_v27, %s1294_s10 }
 0x2d9   :  { %458 = vrot.lane.b32.xlu0 %v381_v26, %s1295_s11 }
 0x2dc   :  { %505 = vrot.lane.b32.xlu1 %v383_v27, %s1296_s12 }
 0x2dd   :  { %463 = vrot.lane.b32.xlu0 %v381_v26, %s1297_s13 }
 0x2e0   :  { %510 = vrot.lane.b32.xlu1 %v383_v27, %s1286_s23 }
 0x2e1   :  { %468 = vrot.lane.b32.xlu0 %v381_v26, %s1298_s14 }
 0x2e4   :  { %515 = vrot.lane.b32.xlu1 %v383_v27, %s1299_s15 }
 0x2e5   :  { %473 = vrot.lane.b32.xlu0 %v381_v26, %s1300_s16 }
 0x2e8   :  { %523 = vrot.lane.b32.xlu1 %v1484_v4, %s1301_s17 }
 0x2e9   :  { %521 = vrot.lane.b32.xlu0 %v383_v27, %s1301_s17 }
 0x2ec   :  { %484 = vrot.lane.b32.xlu1 %v381_v26, %s1302_s18 }
 0x2ed   :  { %478 = vrot.lane.b32.xlu0 %v381_v26, %s1303_s19 }
 0x2f0   :  { %535 = vrot.lane.b32.xlu1 %v1484_v4, %s1304_s20 }
 0x2f1   :  { %486 = vrot.lane.b32.xlu0 %v383_v27, %s1302_s18 }
 0x2f4   :  { %542 = vrot.lane.b32.xlu1 %v1484_v4, %s1305_s21 }
 0x2f5   :  { %530 = vrot.lane.b32.xlu0 %v1484_v4, %s1306_s22 }
 0x2f9   :  { %547 = vrot.lane.b32.xlu0 %v1484_v4, %s1307_s24 }
 0x336   :  { %v759_v36 = vpop.permute.xlu1 %758 }
 0x337   :  { %769 = vst.msk [vmem:[#allocation3] sm:$0xf] %vm255_vm15, %v759_v36  ;;  %v761_v37 = vpop.permute.xlu0 %760  ;;  %vm1771_vm15 = vcmask 572832  }
 0x338   :  { %v764_v38 = vsel %vm249_vm0, %v759_v36, %v761_v37 }
 0x339   :  { %770 = vst [vmem:[#allocation3 + $0x8] sm:$0xf] %v764_v38 }
 0x33a   :  { %v790_v39 = vpop.permute.xlu1 %789 }
 0x33b   :  { %800 = vst.msk [vmem:[#allocation3 + $0x18] sm:$0xf] %vm292_vm2, %v790_v39  ;;  %v778_v40 = vpop.permute.xlu0 %777  ;;  %vm1768_vm2 = vcmask 720432  }
 0x33e   :  { %v776_v41 = vpop.permute.xlu1 %775 }
 0x33f   :  { %v781_v42 = vsel %vm269_vm6, %v776_v41, %v778_v40  ;;  %786 = vst.msk [vmem:[#allocation3] sm:$0xf0] %vm275_vm5, %v776_v41  ;;  %v792_v43 = vpop.permute.xlu0 %791  ;;  %vm476_vm5 = vcmask 736832  }
 0x340   :  { %787 = vst [vmem:[#allocation3 + $0x8] sm:$0xf0] %v781_v42  ;;  %v795_v44 = vsel %vm286_vm3, %v790_v39, %v792_v43 }
 0x341   :  { %801 = vst [vmem:[#allocation3 + $0x20] sm:$0xf] %v795_v44 }
 0x342   :  { %v763_v45 = vpop.permute.xlu1 %762  ;;  %v806_v56 = vld [vmem:[#allocation3 + $0x18] sm:$0xf] }
 0x343   :  { %v765_v46 = vsel %vm249_vm0, %v761_v37, %v763_v45  ;;  %v780_v47 = vpop.permute.xlu0 %779  ;;  %vm471_vm0 = vcmask 589232  }
 0x344   :  { %771 = vst.msk [vmem:[#allocation3 + $0x10] sm:$0xf] %vm258_vm9, %v765_v46  ;;  %v782_v48 = vsel %vm269_vm6, %v778_v40, %v780_v47  ;;  %vm1769_vm6 = vcmask 868032   ;;  %vm540_vm9 = vcmask 113664  }
 0x345   :  { %788 = vst.msk [vmem:[#allocation3 + $0x10] sm:$0xf0] %vm278_vm11, %v782_v48  ;;  %vm1772_vm11 = vcmask 1032032  }
 0x346   :  { %v794_v49 = vpop.permute.xlu1 %793  ;;  %v803_v53 = vld [vmem:[#allocation3] sm:$0xff] }
 0x347   :  { %v796_v50 = vsel %vm286_vm3, %v792_v43, %v794_v49  ;;  %v494_v51 = vpop.permute.xlu0 %493  ;;  %v804_v52 = vld [vmem:[#allocation3 + $0x8] sm:$0xff]  ;;  %v1247_v58 = vpack.c.bf16 %v806_v56, %v803_v53 }
 0x348   :  { %802 = vst.msk [vmem:[#allocation3 + $0x28] sm:$0xf] %vm295_vm10, %v796_v50  ;;  %v807_v54 = vld [vmem:[#allocation3 + $0x20] sm:$0xf]  ;;  %vm488_vm10 = vcmask 949248  }
 0x349   :  { %499 = vst.msk [vmem:[%s1765_s5 + $0x8] sm:$0xff] %vm498_vm1, %v494_v51  ;;  %v1244_v55 = vpack.c.bf16 %v807_v54, %v804_v52 }
 0x34a   :  { %v501_v57 = vpop.permute.xlu1 %500 }
 0x34b   :  { %504 = vst.msk [vmem:[%s1765_s5 + $0x8] sm:$0xff] %vm503_vm4, %v501_v57  ;;  %v459_v59 = vpop.permute.xlu0 %458  ;;  %1246 = vmatprep.subr.msk.bf16.mxu0 %vm1381_vm7, %v1244_v55 }
 0x34c   :  { %462 = vst.msk [vmem:[%s1765_s5] sm:$0xff] %vm461_vm12, %v459_v59  ;;  %1249 = vmatpush1.bf16.msk.msra.mxu0 %vm1381_vm7, %v1247_v58  ;;  %v805_v62 = vld [vmem:[#allocation3 + $0x10] sm:$0xff] }
 0x34e   :  { %v506_v60 = vpop.permute.xlu1 %505 }
 0x34f   :  { %509 = vst.msk [vmem:[%s1765_s5 + $0x8] sm:$0xff] %vm508_vm13, %v506_v60  ;;  %v464_v61 = vpop.permute.xlu0 %463  ;;  %v808_v63 = vld [vmem:[#allocation3 + $0x28] sm:$0xf]  ;;  %1142 = vmatmul.mubr.msk.f32.vlgmr.msra.gmra.mrb[6].mxu0 %vm85_vm8, %v1452_v16 }
 0x350   :  { %467 = vst.msk [vmem:[%s1765_s5] sm:$0xff] %vm466_vm14, %v464_v61  ;;  %v1251_v0 = vpack.c.bf16 %v808_v63, %v805_v62 }
 0x352   :  { %1253 = vmatpush3.bf16.msk.msra.mxu1 %vm1381_vm7, %v1251_v0  ;;  %v511_v1 = vpop.permute.xlu1 %510  ;;  %vm1770_vm7 = vcmask 850944  }
 0x353   :  { %514 = vst.msk [vmem:[%s1765_s5 + $0x8] sm:$0xff] %vm1771_vm15, %v511_v1  ;;  %v469_v2 = vpop.permute.xlu0 %468  ;;  %vm538_vm15 = vcmask 1048544  }
 0x354   :  { %472 = vst.msk [vmem:[%s1765_s5] sm:$0xff] %vm471_vm0, %v469_v2 }
 0x355   :  { %1212 = vmatmul.mubr.msk.f32.vlgmr.msra.gmra.mrb[6].mxu1 %vm85_vm8, %v1452_v16  ;;  %vm481_vm8 = vcmask 884432  }
 0x356   :  { %v516_v3 = vpop.permute.xlu1 %515 }
 0x357   :  { %519 = vst.msk [vmem:[%s1765_s5 + $0x8] sm:$0xff] %vm1768_vm2, %v516_v3  ;;  %v474_v28 = vpop.permute.xlu0 %473  ;;  %vm496_vm2 = vcmask 1048560  }
 0x358   :  { %477 = vst.msk [vmem:[%s1765_s5] sm:$0xff] %vm476_vm5, %v474_v28 }
 0x35a   :  { %v524_v5 = vpop.permute.xlu1 %523 }
 0x35b   :  { %v522_v6 = vpop.permute.xlu0 %521 }
 0x35c   :  { %v526_v7 = vsel %vm1770_vm7, %v522_v6, %v524_v5  ;;  %vm533_vm7 = vcmask 1015632  }
 0x35d   :  { %529 = vst.msk [vmem:[%s1765_s5 + $0x8] sm:$0xff] %vm1769_vm6, %v526_v7  ;;  %vm545_vm6 = vcmask 261232  }
 0x35e   :  { %v485_v8 = vpop.permute.xlu1 %484 }
 0x35f   :  { %v479_v10 = vpop.permute.xlu0 %478 }
 0x360   :  { %482 = vst.msk [vmem:[%s1765_s5] sm:$0xff] %vm481_vm8, %v479_v10 }
 0x362   :  { %v536_v11 = vpop.permute.xlu1 %535 }
 0x363   :  { %541 = vst.msk [vmem:[%s1765_s5 + $0x10] sm:$0xff] %vm540_vm9, %v536_v11  ;;  %v487_v12 = vpop.permute.xlu0 %486 }
 0x364   :  { %v489_v13 = vsel %vm488_vm10, %v485_v8, %v487_v12 }
 0x365   :  { %492 = vst.msk [vmem:[%s1765_s5] sm:$0xff] %vm1772_vm11, %v489_v13  ;;  %vm550_vm11 = vcmask 408832  }
 0x366   :  { %497 = vst.msk [vmem:[%s1765_s5] sm:$0xff] %vm496_vm2, %v494_v51  ;;  %v543_v14 = vpop.permute.xlu1 %542 }
 0x367   :  { %546 = vst.msk [vmem:[%s1765_s5 + $0x10] sm:$0xff] %vm545_vm6, %v543_v14  ;;  %v531_v15 = vpop.permute.xlu0 %530 }
 0x368   :  { %534 = vst.msk [vmem:[%s1765_s5 + $0x8] sm:$0xff] %vm533_vm7, %v531_v15 }
 0x369   :  { %539 = vst.msk [vmem:[%s1765_s5 + $0x8] sm:$0xff] %vm538_vm15, %v536_v11  ;;  %v1309_v11 = vmov 0  }
 0x36a   :  { %1280 = vset.pattern.permute.xlu0 %v1309_v11  ;;  %1281 = vset.pattern.permute.xlu1 %v1309_v11 }
 0x36b   :  { %v548_v16 = vpop.permute.xlu0 %547 }
 0x36c   :  { %551 = vst.msk [vmem:[%s1765_s5 + $0x10] sm:$0xff] %vm550_vm11, %v548_v16 }
 0x36d   :  { %v1040_v43 = vld [vmem:[%s1765_s5] sm:$0xff] }
 0x370   :  { %v1041_v44 = vld [vmem:[%s1765_s5 + $0x8] sm:$0xff] }
 0x422   :  { %v884_v17 = vpop.f32.mrb[6].mxu0 }
 0x423   :  { %1145 = vst.msk [vmem:[%s1765_s5 + $0x18] sm:$0xff] %vm286_vm3, %v884_v17  ;;  %v886_v18 = vpop.f32.mrb[7].mxu0  ;;  %vm1775_vm3 = vcmask 1032032  }
 0x428   :  { %v955_v19 = vpop.f32.mrb[6].mxu1 }
 0x429   :  { %1019 = vrot.lane.b32.xlu0 %v955_v19, %s1306_s22  ;;  %1014 = vrot.lane.b32.xlu1 %v955_v19, %s1301_s17  ;;  %v1213_v20 = vpop.f32.mrb[7].mxu1 }
 0x42a   :  { %v1085_v20 = vld [vmem:[%s1767_s4] sm:$0xff] }
 0x42d   :  { %962 = vrot.lane.b32.xlu0 %v884_v17, %s1295_s11  ;;  %1023 = vrot.lane.b32.xlu1 %v955_v19, %s1304_s20  ;;  %s1308_s11 = smov 94  }
 0x431   :  { %966 = vrot.lane.b32.xlu0 %v884_v17, %s1297_s13  ;;  %1028 = vrot.lane.b32.xlu1 %v955_v19, %s1305_s21 }
 0x435   :  { %970 = vrot.lane.b32.xlu0 %v884_v17, %s1298_s14  ;;  %1032 = vrot.lane.b32.xlu1 %v955_v19, %s1307_s24 }
 0x439   :  { %974 = vrot.lane.b32.xlu0 %v884_v17, %s1300_s16  ;;  %983 = vrot.lane.b32.xlu1 %v884_v17, %s1302_s18 }
 0x43d   :  { %978 = vrot.lane.b32.xlu0 %v884_v17, %s1303_s19  ;;  %990 = vrot.lane.b32.xlu1 %v886_v18, %s1293_s9  ;;  %v1080_v17 = vld [vmem:[%s1766_s3] sm:$0xff] }
 0x441   :  { %1012 = vrot.lane.b32.xlu0 %v886_v18, %s1301_s17  ;;  %995 = vrot.lane.b32.xlu1 %v886_v18, %s1294_s10 }
 0x445   :  { %985 = vrot.lane.b32.xlu0 %v886_v18, %s1302_s18  ;;  %999 = vrot.lane.b32.xlu1 %v886_v18, %s1296_s12 }
 0x449   :  { %552 = vrot.lane.b32.xlu0 %v1484_v4, %s1308_s11  ;;  %1003 = vrot.lane.b32.xlu1 %v886_v18, %s1286_s23 }
 0x44d   :  { %1007 = vrot.lane.b32.xlu1 %v886_v18, %s1299_s15 }
 0x451   :  { %1036 = vrot.lane.b32.xlu1 %v955_v19, %s1308_s11 }
 0x49b   :  { %v1020_v21 = vpop.permute.xlu0 %1019  ;;  %v1015_v22 = vpop.permute.xlu1 %1014 }
 0x49f   :  { %v963_v23 = vpop.permute.xlu0 %962  ;;  %v1024_v24 = vpop.permute.xlu1 %1023 }
 0x4a0   :  { %1146 = vst.msk [vmem:[%s1765_s5 + $0x18] sm:$0xff] %vm461_vm12, %v963_v23  ;;  %vm1777_vm12 = vcmask 850944  }
 0x4a1   :  { %1161 = vst.msk [vmem:[%s1765_s5 + $0x28] sm:$0xff] %vm540_vm9, %v1024_v24 }
 0x4a3   :  { %v967_v25 = vpop.permute.xlu0 %966  ;;  %v1029_v26 = vpop.permute.xlu1 %1028 }
 0x4a4   :  { %1147 = vst.msk [vmem:[%s1765_s5 + $0x18] sm:$0xff] %vm466_vm14, %v967_v25  ;;  %vm1779_vm14 = vcmask 868032  }
 0x4a5   :  { %1162 = vst.msk [vmem:[%s1765_s5 + $0x28] sm:$0xff] %vm545_vm6, %v1029_v26 }
 0x4a7   :  { %v971_v27 = vpop.permute.xlu0 %970  ;;  %v1033_v29 = vpop.permute.xlu1 %1032 }
 0x4a8   :  { %1148 = vst.msk [vmem:[%s1765_s5 + $0x18] sm:$0xff] %vm471_vm0, %v971_v27 }
 0x4a9   :  { %1163 = vst.msk [vmem:[%s1765_s5 + $0x28] sm:$0xff] %vm550_vm11, %v1033_v29 }
 0x4ab   :  { %v975_v30 = vpop.permute.xlu0 %974  ;;  %v984_v4 = vpop.permute.xlu1 %983 }
 0x4ac   :  { %1149 = vst.msk [vmem:[%s1765_s5 + $0x18] sm:$0xff] %vm476_vm5, %v975_v30 }
 0x4af   :  { %v979_v31 = vpop.permute.xlu0 %978  ;;  %v991_v32 = vpop.permute.xlu1 %990 }
 0x4b0   :  { %1150 = vst.msk [vmem:[%s1765_s5 + $0x18] sm:$0xff] %vm481_vm8, %v979_v31 }
 0x4b1   :  { %1153 = vst.msk [vmem:[%s1765_s5 + $0x20] sm:$0xff] %vm498_vm1, %v991_v32  ;;  %vm555_vm1 = vcmask 556432  }
 0x4b3   :  { %v1013_v9 = vpop.permute.xlu0 %1012  ;;  %v996_v33 = vpop.permute.xlu1 %995 }
 0x4b4   :  { %1154 = vst.msk [vmem:[%s1765_s5 + $0x20] sm:$0xff] %vm503_vm4, %v996_v33  ;;  %vm1776_vm4 = vcmask 572832   ;;  %v1016_v40 = vsel %vm1777_vm12, %v1013_v9, %v1015_v22 }
 0x4b7   :  { %v986_v34 = vpop.permute.xlu0 %985  ;;  %v1000_v35 = vpop.permute.xlu1 %999 }
 0x4b8   :  { %v987_v36 = vsel %vm488_vm10, %v984_v4, %v986_v34  ;;  %1155 = vst.msk [vmem:[%s1765_s5 + $0x20] sm:$0xff] %vm508_vm13, %v1000_v35  ;;  %vm1778_vm13 = vcmask 720432  }
 0x4b9   :  { %1151 = vst.msk [vmem:[%s1765_s5 + $0x18] sm:$0xff] %vm1775_vm3, %v987_v36 }
 0x4ba   :  { %1152 = vst.msk [vmem:[%s1765_s5 + $0x18] sm:$0xff] %vm496_vm2, %v991_v32 }
 0x4bb   :  { %v553_v37 = vpop.permute.xlu0 %552  ;;  %v1004_v38 = vpop.permute.xlu1 %1003 }
 0x4bc   :  { %556 = vst.msk [vmem:[%s1765_s5 + $0x10] sm:$0xff] %vm555_vm1, %v553_v37 }
 0x4bd   :  { %1156 = vst.msk [vmem:[%s1765_s5 + $0x20] sm:$0xff] %vm1776_vm4, %v1004_v38 }
 0x4bf   :  { %v1008_v39 = vpop.permute.xlu1 %1007 }
 0x4c0   :  { %1157 = vst.msk [vmem:[%s1765_s5 + $0x20] sm:$0xff] %vm1778_vm13, %v1008_v39 }
 0x4c1   :  { %1158 = vst.msk [vmem:[%s1765_s5 + $0x20] sm:$0xff] %vm1779_vm14, %v1016_v40  ;;  %v1165_v42 = vld [vmem:[%s1765_s5 + $0x18] sm:$0xff] }
 0x4c2   :  { %1159 = vst.msk [vmem:[%s1765_s5 + $0x20] sm:$0xff] %vm533_vm7, %v1020_v21  ;;  %v1046_v48 = vadd.f32 %v1165_v42, %v1040_v43 }
 0x4c3   :  { %1160 = vst.msk [vmem:[%s1765_s5 + $0x20] sm:$0xff] %vm538_vm15, %v1024_v24  ;;  %v1037_v41 = vpop.permute.xlu1 %1036  ;;  %v1042_v46 = vld [vmem:[%s1765_s5 + $0x10] sm:$0xff]  ;;  %vm1050_vm15 = vcmask 556032  }
 0x4c4   :  { %1164 = vst.msk [vmem:[%s1765_s5 + $0x28] sm:$0xff] %vm555_vm1, %v1037_v41 }
 0x4ca   :  { %v1166_v45 = vld [vmem:[%s1765_s5 + $0x20] sm:$0xff] }
 0x4cb   :  { %v1167_v47 = vld [vmem:[%s1765_s5 + $0x28] sm:$0xff]  ;;  %v1047_v49 = vadd.f32 %v1166_v45, %v1041_v44 }
 0x4cc   :  { %v1048_v50 = vadd.f32 %v1167_v47, %v1042_v46 }
 0x4cd   :  { %v1049_v51 = vadd.f32 %v1047_v49, %v1046_v48 }
 0x4ce   :  { %v1051_v52 = vsel %vm1050_vm15, %v1048_v50, 0.0 }
 0x4cf   :  { %v1052_v53 = vadd.f32 %v1051_v52, %v1049_v51 }
 0x4d1   :  { %1053 = vadd.xlane.f32.xlu0 %v1052_v53 }
 0x55e   :  { %v1054_v54 = vpop.xlane.xlu0 %1053 }
 0x55f   :  { %v1055_v55 = vmul.f32 0.0015432099, %v1054_v54 }
 0x561   :  { %v1068_v56 = vsub.f32 %v1165_v42, %v1055_v55  ;;  %v1069_v57 = vsub.f32 %v1166_v45, %v1055_v55  ;;  %v1070_v58 = vsub.f32 %v1167_v47, %v1055_v55  ;;  %v1056_v59 = vsub.f32 %v1040_v43, %v1055_v55 }
 0x562   :  { %v1057_v60 = vsub.f32 %v1041_v44, %v1055_v55  ;;  %v1058_v61 = vsub.f32 %v1042_v46, %v1055_v55 }
 0x563   :  { %v1071_v62 = vmul.f32 %v1068_v56, %v1068_v56  ;;  %v1072_v63 = vmul.f32 %v1069_v57, %v1069_v57  ;;  %v1073_v0 = vmul.f32 %v1070_v58, %v1070_v58  ;;  %v1059_v1 = vmul.f32 %v1056_v59, %v1056_v59 }
 0x564   :  { %v1060_v2 = vmul.f32 %v1057_v60, %v1057_v60  ;;  %v1061_v3 = vmul.f32 %v1058_v61, %v1058_v61 }
 0x565   :  { %v1074_v28 = vadd.f32 %v1072_v63, %v1071_v62  ;;  %v1075_v5 = vsel %vm1050_vm15, %v1073_v0, 0.0 }
 0x566   :  { %v1062_v6 = vadd.f32 %v1060_v2, %v1059_v1  ;;  %v1063_v7 = vsel %vm1050_vm15, %v1061_v3, 0.0 }
 0x567   :  { %v1076_v8 = vadd.f32 %v1075_v5, %v1074_v28 }
 0x568   :  { %v1064_v10 = vadd.f32 %v1063_v7, %v1062_v6 }
 0x569   :  { %1077 = vadd.xlane.f32.xlu0 %v1076_v8 }
 0x56a   :  { %1065 = vadd.xlane.f32.xlu1 %v1064_v10 }
 0x5f6   :  { %v1078_v12 = vpop.xlane.xlu0 %1077 }
 0x5f7   :  { %v1066_v13 = vpop.xlane.xlu1 %1065 }
 0x5f8   :  { %v1079_v14 = vadd.f32 %v1078_v12, %v1066_v13 }
 0x5fa   :  { %v1081_v15 = vmul.f32 0.0015432099, %v1079_v14 }
 0x5fc   :  { %v1082_v16 = vadd.f32 1e-05, %v1081_v15 }
 0x5fe   :  { %1282 = vrsqrt.f32 %v1082_v16 }
 0x608   :  { %v1283_v18 = vpop.eup %1282 }
 0x609   :  { %v1084_v19 = vmul.f32 %v1283_v18, %v1080_v17 }
 0x60b   :  { %1090 = vperm.xlu0 %1280, %v1084_v19   ;;  %v1086_v21 = vmul.f32 %v1084_v19, %v1055_v55 }
 0x60d   :  { %v1087_v22 = vsub.f32 %v1085_v20, %v1086_v21 }
 0x60f   :  { %1098 = vperm.xlu1 %1281, %v1087_v22  }
 0x68a   :  { %v1091_v23 = vpop.permute.xlu0 %1090 }
 0x68b   :  { %v1093_v24 = vmul.f32 %v1091_v23, %v1040_v43  ;;  %v1094_v25 = vmul.f32 %v1091_v23, %v1041_v44  ;;  %v1095_v26 = vmul.f32 %v1091_v23, %v1042_v46  ;;  %v1110_v27 = vmul.f32 %v1165_v42, %v1091_v23 }
 0x68c   :  { %v1111_v29 = vmul.f32 %v1166_v45, %v1091_v23  ;;  %v1112_v30 = vmul.f32 %v1167_v47, %v1091_v23 }
 0x68e   :  { %v1099_v4 = vpop.permute.xlu1 %1098 }
 0x68f   :  { %v1101_v31 = vadd.f32 %v1099_v4, %v1093_v24  ;;  %v1102_v32 = vadd.f32 %v1099_v4, %v1094_v25  ;;  %v1103_v9 = vadd.f32 %v1099_v4, %v1095_v26  ;;  %v1113_v33 = vadd.f32 %v1110_v27, %v1099_v4 }
 0x690   :  { %v1114_v34 = vadd.f32 %v1111_v29, %v1099_v4  ;;  %v1115_v35 = vadd.f32 %v1112_v30, %v1099_v4 }
 0x691   :  { %1104 = vst [vmem:[%s1765_s5] sm:$0xff] %v1101_v31  ;;  %1105 = vst [vmem:[%s1765_s5 + $0x8] sm:$0xff] %v1102_v32 }
 0x692   :  { %1106 = vst.msk [vmem:[%s1765_s5 + $0x10] sm:$0xff] %vm1050_vm15, %v1103_v9  ;;  %1171 = vst [vmem:[%s1765_s5 + $0x18] sm:$0xff] %v1113_v33 }
 0x693   :  { %1172 = vst [vmem:[%s1765_s5 + $0x20] sm:$0xff] %v1114_v34  ;;  %1173 = vst.msk [vmem:[%s1765_s5 + $0x28] sm:$0xff] %vm1050_vm15, %v1115_v35 }

</bundles_post_ra>
